<compile_context>
chip_gen: v7x
topology: tpu7x:2x2x1
jax: 0.10.0
libtpu: 0.0.40
codegen_flags: <defaults>
</compile_context>

<pallas_src>
import jax
import jax.numpy as jnp
from jax.experimental import pallas as pl
from jax.experimental.pallas import tpu as pltpu

LANE = 128          # TPU lane width; also matches v5e's 4x128 MXU exactly
MAX_TILE_B = 2048   # big tiles amortize the ~0.35 us per-grid-step overhead


def _round_up(v, m):
    return (v + m - 1) // m * m


def _choose_tile_b(B):
    """Pick a batch tile: whole batch when it fits (<= MAX_TILE_B rows), else the
    largest multiple-of-8 divisor of B <= MAX_TILE_B (avoids batch padding), else
    fall back to MAX_TILE_B with a ragged last tile handled by zero-padding."""
    if B <= MAX_TILE_B:
        return _round_up(B, 8)
    for cand in range(MAX_TILE_B, 7, -8):
        if B % cand == 0:
            return cand
    return MAX_TILE_B


def mlp_kernel(x_ref, w1_ref, b1_ref, w2_ref, b2_ref, w3_ref, b3_ref, o_ref):
    """One batch tile per grid step. Weights/biases are VMEM-resident.

    Matmuls hit the MXU in the weights' compute dtype (bf16 or f32) with f32
    accumulation; the f32->bf16 input cast, bias-add and ReLU run on the VPU
    (which has plenty of slack here).
    """
    cdt = w1_ref.dtype                      # MXU operand dtype (bf16 by default)
    x = x_ref[...].astype(cdt)              # in-kernel cast: x streamed as f32
    h = jnp.dot(x, w1_ref[...],
                preferred_element_type=jnp.float32) + b1_ref[...]
    h = jnp.maximum(h, 0.0).astype(cdt)
    h = jnp.dot(h, w2_ref[...],
                preferred_element_type=jnp.float32) + b2_ref[...]
    h = jnp.maximum(h, 0.0).astype(cdt)
    out = jnp.dot(h, w3_ref[...],
                  preferred_element_type=jnp.float32) + b3_ref[...]
    o_ref[...] = out.astype(o_ref.dtype)


def init_params(key, n_in, n_hidden, n_out):
    """PyTorch-style Linear init: U(-1/sqrt(fan_in), 1/sqrt(fan_in)).
    Weights stored transposed: (fan_in, fan_out)."""
    dims = [n_in] + list(n_hidden) + [n_out]
    params = {}
    for i, name in enumerate(["1", "2", "3"]):
        fan_in, fan_out = dims[i], dims[i + 1]
        key, kw, kb = jax.random.split(key, 3)
        bound = 1.0 / (fan_in ** 0.5)
        params["w" + name] = jax.random.uniform(
            kw, (fan_in, fan_out), jnp.float32, -bound, bound)
        # bias kept 2-D (1, fan_out) so it broadcasts cleanly along sublanes
        params["b" + name] = jax.random.uniform(
            kb, (1, fan_out), jnp.float32, -bound, bound)
    return params


def pad_params(params, *, use_bf16=True, lane=LANE):
    """Zero-pad hidden/output feature dims to 128-lane multiples and cast the
    MXU operands (weights) to the compute dtype. Padded rows/cols are zero, so
    the first n_out output columns are unchanged. Biases stay f32."""
    cdt = jnp.bfloat16 if use_bf16 else jnp.float32
    out = {}
    for name in ("1", "2", "3"):
        w, b = params["w" + name], params["b" + name]
        fi, fo = w.shape
        fi_p = fi if name == "1" else _round_up(fi, lane)  # n_in left as-is
        fo_p = _round_up(fo, lane)
        w_p = jnp.zeros((fi_p, fo_p), cdt).at[:fi, :fo].set(w.astype(cdt))
        b_p = jnp.zeros((1, fo_p), jnp.float32).at[:, :fo].set(b)
        out["w" + name], out["b" + name] = w_p, b_p
    return out


def net_forward(x, params, *, tile_b=None, use_bf16=True, out_dtype=None,
                return_padded=False):
    """x: (B, n_in) float32. params: raw (unpadded) transposed weights/biases.

    Returns (B, n_out) by default; `return_padded=True` returns the lane-dense
    (b_pad, n_out_padded) slab so a downstream consumer can avoid the extra
    slice pass over HBM.
    """
    B, n_in = x.shape
    n_out = params["w3"].shape[1]
    cdt = jnp.bfloat16 if use_bf16 else jnp.float32
    if out_dtype is None:
        out_dtype = cdt          # bf16 writeback halves the dominant HBM stream
    p = pad_params(params, use_bf16=use_bf16)
    h1p, h2p, n_out_p = p["w1"].shape[1], p["w2"].shape[1], p["w3"].shape[1]

    if tile_b is None:
        tile_b = _choose_tile_b(B)
    b_pad = _round_up(B, tile_b)

    x_in = x                      # x stays f32; the kernel casts on the VPU
    if b_pad != B:                # only pad when the batch is ragged w.r.t. tile
        x_in = jnp.pad(x, ((0, b_pad - B), (0, 0)))

    grid = (b_pad // tile_b,)
    # Constant index_map => DMA'd once, VMEM-resident across all grid steps.
    resident = lambda shape: pl.BlockSpec(shape, lambda i: (0, 0))

    # Advisory cost hint so XLA can overlap this tiny custom call.
    flops = 2 * b_pad * (n_in * h1p + h1p * h2p + h2p * n_out_p)
    bytes_accessed = (
        int(x_in.size) * x_in.dtype.itemsize
        + sum(int(v.size) * v.dtype.itemsize for v in p.values())
        + b_pad * n_out_p * jnp.dtype(out_dtype).itemsize)

    out_padded = pl.pallas_call(
        mlp_kernel,
        out_shape=jax.ShapeDtypeStruct((b_pad, n_out_p), out_dtype),
        grid=grid,
        in_specs=[
            pl.BlockSpec((tile_b, n_in), lambda i: (i, 0)),    # x, streamed
            resident((n_in, h1p)), resident((1, h1p)),         # layer 1
            resident((h1p, h2p)), resident((1, h2p)),          # layer 2
            resident((h2p, n_out_p)), resident((1, n_out_p)),  # output layer
        ],
        out_specs=pl.BlockSpec((tile_b, n_out_p), lambda i: (i, 0)),
        compiler_params=pltpu.CompilerParams(
            dimension_semantics=("parallel",),   # shard batch tiles on v7x TCs
            vmem_limit_bytes=16 * 1024 * 1024,   # actual footprint is a few MiB
        ),
        cost_estimate=pl.CostEstimate(
            flops=flops, transcendentals=0, bytes_accessed=bytes_accessed),
    )(x_in, p["w1"], p["b1"], p["w2"], p["b2"], p["w3"], p["b3"])

    if return_padded:
        return out_padded
    return out_padded[:B, :n_out]


def reference_forward(x, p, *, use_bf16=True):
    """Pure-JAX reference with the same bf16-operand / f32-accumulate recipe
    (final result kept in f32)."""
    cdt = jnp.bfloat16 if use_bf16 else jnp.float32
    h = jnp.dot(x.astype(cdt), p["w1"].astype(cdt),
                preferred_element_type=jnp.float32) + p["b1"]
    h = jnp.maximum(h, 0.0)
    h = jnp.dot(h.astype(cdt), p["w2"].astype(cdt),
                preferred_element_type=jnp.float32) + p["b2"]
    h = jnp.maximum(h, 0.0)
    return jnp.dot(h.astype(cdt), p["w3"].astype(cdt),
                   preferred_element_type=jnp.float32) + p["b3"]


if __name__ == "__main__":
    key = jax.random.PRNGKey(0)
    k_x, k_p = jax.random.split(key)

    batch, n_in = 512, 32          # single 512-row tile, no batch padding
    n_hidden = [50, 50]
    n_out = 20

    x = jax.random.normal(k_x, (batch, n_in), jnp.float32)
    # standardize(X): (X - mean) / std over the batch axis (guard zero std)
    mean = jnp.mean(x, axis=0)
    std = jnp.std(x, axis=0)
    x = (x - mean) / jnp.where(std == 0, 1.0, std)

    params = init_params(k_p, n_in, n_hidden, n_out)

    # Fast path: bf16 MXU operands + bf16 output writeback.
    out = jax.block_until_ready(net_forward(x, params))
    ref = reference_forward(x, params)
    assert out.shape == (batch, n_out)
    err = float(jnp.max(jnp.abs(out.astype(jnp.float32) - ref)))
    assert jnp.allclose(out.astype(jnp.float32), ref, atol=3e-2, rtol=3e-2), err

    # f32 parity path (closest to the PyTorch f32 model).
    out32 = jax.block_until_ready(net_forward(x, params, use_bf16=False))
    ref32 = reference_forward(x, params, use_bf16=False)
    assert out32.dtype == jnp.float32
    assert jnp.allclose(out32, ref32, atol=1e-4, rtol=1e-4), float(
        jnp.max(jnp.abs(out32 - ref32)))

    # TODO(synk): training loop (CrossEntropyLoss + SGD), train/test split and
    # accuracy evaluation from the original script are host-side, not kernels.
    print("KERNEL_OK")
</pallas_src>

<mosaic_0001>
module attributes {stable_mosaic.version = 11 : i64} {
  func.func @mlp_kernel(%arg0: i32, %arg1: memref<512x32xf32, #tpu.memory_space<vmem>>, %arg2: memref<32x128xbf16, #tpu.memory_space<vmem>>, %arg3: memref<1x128xf32, #tpu.memory_space<vmem>>, %arg4: memref<128x128xbf16, #tpu.memory_space<vmem>>, %arg5: memref<1x128xf32, #tpu.memory_space<vmem>>, %arg6: memref<128x128xbf16, #tpu.memory_space<vmem>>, %arg7: memref<1x128xf32, #tpu.memory_space<vmem>>, %arg8: memref<512x128xbf16, #tpu.memory_space<vmem>>) attributes {dimension_semantics = [#tpu.dimension_semantics<parallel>], iteration_bounds = array<i64: 1>, scalar_prefetch = 0 : i64, scratch_operands = 0 : i64, tpu.core_type = #tpu.core_type<tc>, window_params = [{transform_indices = @transform_0, window_bounds = array<i64: 512, 32>}, {pipeline_mode = #tpu.pipeline_mode<synchronous>, transform_indices = @transform_1, window_bounds = array<i64: 32, 128>}, {pipeline_mode = #tpu.pipeline_mode<synchronous>, transform_indices = @transform_2, window_bounds = array<i64: 1, 128>}, {pipeline_mode = #tpu.pipeline_mode<synchronous>, transform_indices = @transform_3, window_bounds = array<i64: 128, 128>}, {pipeline_mode = #tpu.pipeline_mode<synchronous>, transform_indices = @transform_4, window_bounds = array<i64: 1, 128>}, {pipeline_mode = #tpu.pipeline_mode<synchronous>, transform_indices = @transform_5, window_bounds = array<i64: 128, 128>}, {pipeline_mode = #tpu.pipeline_mode<synchronous>, transform_indices = @transform_6, window_bounds = array<i64: 1, 128>}, {transform_indices = @transform_7, window_bounds = array<i64: 512, 128>}]} {
    %c0 = arith.constant 0 : index
    %c0_0 = arith.constant 0 : index
    %0 = vector.load %arg1[%c0, %c0_0] : memref<512x32xf32, #tpu.memory_space<vmem>>, vector<512x32xf32>
    %1 = arith.truncf %0 : vector<512x32xf32> to vector<512x32xbf16>
    %c0_1 = arith.constant 0 : index
    %c0_2 = arith.constant 0 : index
    %2 = vector.load %arg2[%c0_1, %c0_2] : memref<32x128xbf16, #tpu.memory_space<vmem>>, vector<32x128xbf16>
    %cst = arith.constant dense<0.000000e+00> : vector<512x128xf32>
    %3 = tpu.matmul %1, %2, %cst {dimension_numbers = #tpu.dot_dimension_numbers<[1], [0], [0], [1], [0, 0, 1, 1], [], []>} : vector<512x32xbf16>, vector<32x128xbf16>, vector<512x128xf32> -> vector<512x128xf32>
    %c0_3 = arith.constant 0 : index
    %c0_4 = arith.constant 0 : index
    %4 = vector.load %arg3[%c0_3, %c0_4] : memref<1x128xf32, #tpu.memory_space<vmem>>, vector<1x128xf32>
    %5 = vector.broadcast %4 : vector<1x128xf32> to vector<512x128xf32>
    %6 = arith.addf %3, %5 : vector<512x128xf32>
    %cst_5 = arith.constant 0.000000e+00 : f32
    %7 = vector.broadcast %cst_5 : f32 to vector<512x128xf32>
    %8 = arith.maximumf %6, %7 : vector<512x128xf32>
    %9 = arith.truncf %8 : vector<512x128xf32> to vector<512x128xbf16>
    %c0_6 = arith.constant 0 : index
    %c0_7 = arith.constant 0 : index
    %10 = vector.load %arg4[%c0_6, %c0_7] : memref<128x128xbf16, #tpu.memory_space<vmem>>, vector<128x128xbf16>
    %cst_8 = arith.constant dense<0.000000e+00> : vector<512x128xf32>
    %11 = tpu.matmul %9, %10, %cst_8 {dimension_numbers = #tpu.dot_dimension_numbers<[1], [0], [0], [1], [0, 0, 1, 1], [], []>} : vector<512x128xbf16>, vector<128x128xbf16>, vector<512x128xf32> -> vector<512x128xf32>
    %c0_9 = arith.constant 0 : index
    %c0_10 = arith.constant 0 : index
    %12 = vector.load %arg5[%c0_9, %c0_10] : memref<1x128xf32, #tpu.memory_space<vmem>>, vector<1x128xf32>
    %13 = vector.broadcast %12 : vector<1x128xf32> to vector<512x128xf32>
    %14 = arith.addf %11, %13 : vector<512x128xf32>
    %cst_11 = arith.constant 0.000000e+00 : f32
    %15 = vector.broadcast %cst_11 : f32 to vector<512x128xf32>
    %16 = arith.maximumf %14, %15 : vector<512x128xf32>
    %17 = arith.truncf %16 : vector<512x128xf32> to vector<512x128xbf16>
    %c0_12 = arith.constant 0 : index
    %c0_13 = arith.constant 0 : index
    %18 = vector.load %arg6[%c0_12, %c0_13] : memref<128x128xbf16, #tpu.memory_space<vmem>>, vector<128x128xbf16>
    %cst_14 = arith.constant dense<0.000000e+00> : vector<512x128xf32>
    %19 = tpu.matmul %17, %18, %cst_14 {dimension_numbers = #tpu.dot_dimension_numbers<[1], [0], [0], [1], [0, 0, 1, 1], [], []>} : vector<512x128xbf16>, vector<128x128xbf16>, vector<512x128xf32> -> vector<512x128xf32>
    %c0_15 = arith.constant 0 : index
    %c0_16 = arith.constant 0 : index
    %20 = vector.load %arg7[%c0_15, %c0_16] : memref<1x128xf32, #tpu.memory_space<vmem>>, vector<1x128xf32>
    %21 = vector.broadcast %20 : vector<1x128xf32> to vector<512x128xf32>
    %22 = arith.addf %19, %21 : vector<512x128xf32>
    %23 = arith.truncf %22 : vector<512x128xf32> to vector<512x128xbf16>
    %c0_17 = arith.constant 0 : index
    %c0_18 = arith.constant 0 : index
    %24 = vector.load %arg8[%c0_17, %c0_18] : memref<512x128xbf16, #tpu.memory_space<vmem>>, vector<512x128xbf16>
    tpu.vector_store %arg8[%c0_17, %c0_18], %23 {strides = array<i32>} : memref<512x128xbf16, #tpu.memory_space<vmem>>, vector<512x128xbf16>,
    return
  }
  func.func @transform_0(%arg0: i32) -> (i32, i32) {
    %c0_i32 = arith.constant 0 : i32
    %c0_i32_0 = arith.constant 0 : i32
    return %arg0, %c0_i32 : i32, i32
  }
  func.func @transform_1(%arg0: i32) -> (i32, i32) {
    %c0_i32 = arith.constant 0 : i32
    %c0_i32_0 = arith.constant 0 : i32
    %c0_i32_1 = arith.constant 0 : i32
    return %c0_i32, %c0_i32_0 : i32, i32
  }
  func.func @transform_2(%arg0: i32) -> (i32, i32) {
    %c0_i32 = arith.constant 0 : i32
    %c0_i32_0 = arith.constant 0 : i32
    %c0_i32_1 = arith.constant 0 : i32
    return %c0_i32, %c0_i32_0 : i32, i32
  }
  func.func @transform_3(%arg0: i32) -> (i32, i32) {
    %c0_i32 = arith.constant 0 : i32
    %c0_i32_0 = arith.constant 0 : i32
    %c0_i32_1 = arith.constant 0 : i32
    return %c0_i32, %c0_i32_0 : i32, i32
  }
  func.func @transform_4(%arg0: i32) -> (i32, i32) {
    %c0_i32 = arith.constant 0 : i32
    %c0_i32_0 = arith.constant 0 : i32
    %c0_i32_1 = arith.constant 0 : i32
    return %c0_i32, %c0_i32_0 : i32, i32
  }
  func.func @transform_5(%arg0: i32) -> (i32, i32) {
    %c0_i32 = arith.constant 0 : i32
    %c0_i32_0 = arith.constant 0 : i32
    %c0_i32_1 = arith.constant 0 : i32
    return %c0_i32, %c0_i32_0 : i32, i32
  }
  func.func @transform_6(%arg0: i32) -> (i32, i32) {
    %c0_i32 = arith.constant 0 : i32
    %c0_i32_0 = arith.constant 0 : i32
    %c0_i32_1 = arith.constant 0 : i32
    return %c0_i32, %c0_i32_0 : i32, i32
  }
  func.func @transform_7(%arg0: i32) -> (i32, i32) {
    %c0_i32 = arith.constant 0 : i32
    %c0_i32_0 = arith.constant 0 : i32
    return %arg0, %c0_i32 : i32, i32
  }
}

</mosaic_0001>

<bundles_post_ra>
// kernel: tpu_custom_call.1
= control target key start
LH: loop header
LB: loop body
LE: loop exit
PB: predicated region body
PF: predicated region fallthrough
CT: control target
= control target key end

     0   :  { %vm147_vm0 = vcmask 261120   ;;  %s3117_s0 = inlined_call_operand.vmem [shape: f32[512,32], index: 0, kind: input, shape index: {}]   ;;  %s3118_s1 = inlined_call_operand.vmem [shape: bf16[32,128], index: 1, kind: input, shape index: {}]   ;;  %s3119_s2 = inlined_call_operand.vmem [shape: f32[1,128], index: 2, kind: input, shape index: {}]   ;;  %s3120_s3 = inlined_call_operand.vmem [shape: bf16[128,128], index: 3, kind: input, shape index: {}]   ;;  %s3121_s4 = inlined_call_operand.vmem [shape: f32[1,128], index: 4, kind: input, shape index: {}]   ;;  %s3122_s5 = inlined_call_operand.vmem [shape: bf16[128,128], index: 5, kind: input, shape index: {}]   ;;  %s3123_s6 = inlined_call_operand.vmem [shape: f32[1,128], index: 6, kind: input, shape index: {}]   ;;  %s3124_s7 = inlined_call_operand.hbm [shape: bf16[512,128], index: 7, kind: output, shape index: {}]  }
   0x1   :  { %v2502_v0 = vld [vmem:[%s3118_s1] sm:$0xff]   ;;  %v2503_v1 = vld [vmem:[%s3118_s1 + $0x8] sm:$0xff]   ;;  %v30_v5 = vld [vmem:[%s3117_s0 + $0x10] sm:$0xff] }
   0x2   :  { %2267 = vmatprep.subr.bf16.mxu0 %v2502_v0  ;;  %v28_v2 = vld [vmem:[%s3117_s0] sm:$0xff]  ;;  %v29_v3 = vld [vmem:[%s3117_s0 + $0x8] sm:$0xff]  ;;  %2495 = vmatprep.subr.bf16.mxu1 %v2502_v0  ;;  %v31_v6 = vld [vmem:[%s3117_s0 + $0x18] sm:$0xff] }
   0x3   :  { %2268 = vmatpush3.bf16.msra.mxu0 %v2502_v0  ;;  %v92_v4 = vpack.c.bf16 %v29_v3, %v28_v2  ;;  %2497 = vmatpush3.bf16.msra.mxu1 %v2502_v0  ;;  %v32_v7 = vld [vmem:[%s3117_s0 + $0x20] sm:$0xff]  ;;  %v33_v8 = vld [vmem:[%s3117_s0 + $0x28] sm:$0xff]  ;;  %v93_v9 = vpack.c.bf16 %v31_v6, %v30_v5  ;;  %v34_v11 = vld [vmem:[%s3117_s0 + $0x30] sm:$0xff] }
   0x4   :  { %2269 = vmatprep.subr.bf16.mxu0 %v2503_v1  ;;  %2496 = vmatprep.subr.bf16.mxu1 %v2503_v1  ;;  %v94_v10 = vpack.c.bf16 %v33_v8, %v32_v7  ;;  %v35_v12 = vld [vmem:[%s3117_s0 + $0x38] sm:$0xff]  ;;  %v36_v13 = vld [vmem:[%s3117_s0 + $0x40] sm:$0xff]  ;;  %v37_v14 = vld [vmem:[%s3117_s0 + $0x48] sm:$0xff] }
   0x5   :  { %2271 = vmatprep.mubr.msk.bf16.mxu0 %vm147_vm0, %v92_v4  ;;  %v60_v15 = vld [vmem:[%s3117_s0 + $0x100] sm:$0xff]  ;;  %v61_v16 = vld [vmem:[%s3117_s0 + $0x108] sm:$0xff]  ;;  %v62_v17 = vld [vmem:[%s3117_s0 + $0x110] sm:$0xff]  ;;  %v95_v19 = vpack.c.bf16 %v35_v12, %v34_v11  ;;  %v96_v24 = vpack.c.bf16 %v37_v14, %v36_v13 }
   0x6   :  { %v63_v18 = vld [vmem:[%s3117_s0 + $0x118] sm:$0xff]  ;;  %v108_v20 = vpack.c.bf16 %v61_v16, %v60_v15  ;;  %v64_v22 = vld [vmem:[%s3117_s0 + $0x120] sm:$0xff]  ;;  %v65_v23 = vld [vmem:[%s3117_s0 + $0x128] sm:$0xff] }
   0x7   :  { %2270 = vmatpush3.bf16.msra.mxu0 %v2503_v1  ;;  %2498 = vmatpush3.bf16.msra.mxu1 %v2503_v1  ;;  %v109_v21 = vpack.c.bf16 %v63_v18, %v62_v17  ;;  %v110_v25 = vpack.c.bf16 %v65_v23, %v64_v22  ;;  %v38_v26 = vld [vmem:[%s3117_s0 + $0x50] sm:$0xff]  ;;  %v67_v28 = vld [vmem:[%s3117_s0 + $0x138] sm:$0xff]  ;;  %v68_v30 = vld [vmem:[%s3117_s0 + $0x140] sm:$0xff] }
   0x8   :  { %2303 = vmatprep.mubr.msk.bf16.mxu1 %vm147_vm0, %v108_v20  ;;  %v66_v27 = vld [vmem:[%s3117_s0 + $0x130] sm:$0xff]  ;;  %v39_v29 = vld [vmem:[%s3117_s0 + $0x58] sm:$0xff]  ;;  %v69_v31 = vld [vmem:[%s3117_s0 + $0x148] sm:$0xff] }
   0x9   :  { %v40_v32 = vld [vmem:[%s3117_s0 + $0x60] sm:$0xff]  ;;  %v41_v33 = vld [vmem:[%s3117_s0 + $0x68] sm:$0xff]  ;;  %v111_v34 = vpack.c.bf16 %v67_v28, %v66_v27  ;;  %v97_v35 = vpack.c.bf16 %v39_v29, %v38_v26  ;;  %v112_v36 = vpack.c.bf16 %v69_v31, %v68_v30  ;;  %v70_v38 = vld [vmem:[%s3117_s0 + $0x150] sm:$0xff] }
   0xa   :  { %2272 = vmatmul.mubr.msk.bf16.vlgmr.msra.gmra.mrb[0].mxu0 %vm147_vm0, %v93_v9  ;;  %2304 = vmatmul.mubr.msk.bf16.vlgmr.msra.gmra.mrb[0].mxu1 %vm147_vm0, %v109_v21  ;;  %v98_v37 = vpack.c.bf16 %v41_v33, %v40_v32  ;;  %v71_v39 = vld [vmem:[%s3117_s0 + $0x158] sm:$0xff]  ;;  %v2504_v40 = vld [vmem:[%s3120_s3] sm:$0xff]   ;;  %v42_v41 = vld [vmem:[%s3117_s0 + $0x70] sm:$0xff] }
   0xb   :  { %2275 = vmatprep.mubr.msk.bf16.mxu0 %vm147_vm0, %v94_v10  ;;  %2307 = vmatprep.mubr.msk.bf16.mxu1 %vm147_vm0, %v110_v25  ;;  %v43_v42 = vld [vmem:[%s3117_s0 + $0x78] sm:$0xff]  ;;  %v2505_v43 = vld [vmem:[%s3120_s3 + $0x8] sm:$0xff]   ;;  %v44_v44 = vld [vmem:[%s3117_s0 + $0x80] sm:$0xff]  ;;  %v113_v48 = vpack.c.bf16 %v71_v39, %v70_v38 }
   0xc   :  { %v72_v45 = vld [vmem:[%s3117_s0 + $0x160] sm:$0xff]  ;;  %v73_v46 = vld [vmem:[%s3117_s0 + $0x168] sm:$0xff]  ;;  %2335 = vmatprep.subr.bf16.mxu1 %v2504_v40  ;;  %v2506_v49 = vld [vmem:[%s3120_s3 + $0x10] sm:$0xff]   ;;  %v99_v50 = vpack.c.bf16 %v43_v42, %v42_v41 }
   0xd   :  { %v45_v47 = vld [vmem:[%s3117_s0 + $0x88] sm:$0xff]  ;;  %2336 = vmatpush3.bf16.msra.mxu1 %v2504_v40  ;;  %v114_v51 = vpack.c.bf16 %v73_v46, %v72_v45  ;;  %v2507_v53 = vld [vmem:[%s3120_s3 + $0x18] sm:$0xff]   ;;  %v74_v54 = vld [vmem:[%s3117_s0 + $0x170] sm:$0xff] }
   0xe   :  { %2337 = vmatprep.subr.bf16.mxu1 %v2505_v43  ;;  %v100_v52 = vpack.c.bf16 %v45_v47, %v44_v44  ;;  %v75_v55 = vld [vmem:[%s3117_s0 + $0x178] sm:$0xff]  ;;  %v46_v56 = vld [vmem:[%s3117_s0 + $0x90] sm:$0xff]  ;;  %v76_v58 = vld [vmem:[%s3117_s0 + $0x180] sm:$0xff] }
   0xf   :  { %v47_v57 = vld [vmem:[%s3117_s0 + $0x98] sm:$0xff]  ;;  %v77_v59 = vld [vmem:[%s3117_s0 + $0x188] sm:$0xff]  ;;  %v48_v60 = vld [vmem:[%s3117_s0 + $0xa0] sm:$0xff] }
  0x10   :  { %v49_v61 = vld [vmem:[%s3117_s0 + $0xa8] sm:$0xff] }
  0x11   :  { %2338 = vmatpush3.bf16.msra.mxu1 %v2505_v43 }
  0x12   :  { %2276 = vmatmul.mubr.msk.bf16.gmra.mrb[4].mxu0 %vm147_vm0, %v95_v19  ;;  %2308 = vmatmul.mubr.msk.bf16.gmra.mrb[4].mxu1 %vm147_vm0, %v111_v34 }
  0x13   :  { %2279 = vmatprep.mubr.msk.bf16.mxu0 %vm147_vm0, %v96_v24  ;;  %2311 = vmatprep.mubr.msk.bf16.mxu1 %vm147_vm0, %v112_v36 }
  0x14   :  { %2339 = vmatprep.subr.bf16.mxu1 %v2506_v49 }
  0x15   :  { %2340 = vmatpush3.bf16.msra.mxu1 %v2506_v49 }
  0x1a   :  { %2280 = vmatmul.mubr.msk.bf16.gmra.mrb[8].mxu0 %vm147_vm0, %v97_v35  ;;  %2312 = vmatmul.mubr.msk.bf16.gmra.mrb[8].mxu1 %vm147_vm0, %v113_v48 }
  0x1b   :  { %2283 = vmatprep.mubr.msk.bf16.mxu0 %vm147_vm0, %v98_v37  ;;  %2315 = vmatprep.mubr.msk.bf16.mxu1 %vm147_vm0, %v114_v51 }
  0x22   :  { %2284 = vmatmul.mubr.msk.bf16.gmra.mrb[12].mxu0 %vm147_vm0, %v99_v50 }
  0x23   :  { %2287 = vmatprep.mubr.msk.bf16.mxu0 %vm147_vm0, %v100_v52 }
  0x24   :  { %12 = vsyncpa [#allocation3], 0  ;;  %v115_v62 = vpack.c.bf16 %v75_v55, %v74_v54  ;;  %2341 = vmatprep.subr.bf16.mxu1 %v2507_v53  ;;  %v2508_v63 = vld [vmem:[%s3120_s3 + $0x20] sm:$0xff]   ;;  %v101_v0 = vpack.c.bf16 %v47_v57, %v46_v56  ;;  %v116_v1 = vpack.c.bf16 %v77_v59, %v76_v58  ;;  %v102_v2 = vpack.c.bf16 %v49_v61, %v48_v60  ;;  %v2509_v3 = vld [vmem:[%s3120_s3 + $0x28] sm:$0xff]  }
  0x25   :  { %2342 = vmatpush3.bf16.msra.mxu1 %v2507_v53  ;;  %v50_v4 = vld [vmem:[%s3117_s0 + $0xb0] sm:$0xff]  ;;  %v79_v6 = vld [vmem:[%s3117_s0 + $0x198] sm:$0xff]  ;;  %v80_v8 = vld [vmem:[%s3117_s0 + $0x1a0] sm:$0xff] }
  0x26   :  { %2316 = vmatmul.mubr.msk.bf16.gmra.mrb[12].mxu1 %vm147_vm0, %v115_v62  ;;  %2343 = vmatprep.subr.bf16.mxu1 %v2508_v63  ;;  %v78_v5 = vld [vmem:[%s3117_s0 + $0x190] sm:$0xff]  ;;  %v51_v7 = vld [vmem:[%s3117_s0 + $0xb8] sm:$0xff]  ;;  %v81_v9 = vld [vmem:[%s3117_s0 + $0x1a8] sm:$0xff] }
  0x27   :  { %2319 = vmatprep.mubr.msk.bf16.mxu1 %vm147_vm0, %v116_v1  ;;  %v52_v10 = vld [vmem:[%s3117_s0 + $0xc0] sm:$0xff]  ;;  %v53_v11 = vld [vmem:[%s3117_s0 + $0xc8] sm:$0xff]  ;;  %v117_v12 = vpack.c.bf16 %v79_v6, %v78_v5  ;;  %v2510_v13 = vld [vmem:[%s3120_s3 + $0x30] sm:$0xff]   ;;  %v103_v14 = vpack.c.bf16 %v51_v7, %v50_v4  ;;  %v118_v15 = vpack.c.bf16 %v81_v9, %v80_v8 }
  0x28   :  { %v104_v16 = vpack.c.bf16 %v53_v11, %v52_v10  ;;  %v54_v17 = vld [vmem:[%s3117_s0 + $0xd0] sm:$0xff]  ;;  %v83_v19 = vld [vmem:[%s3117_s0 + $0x1b8] sm:$0xff]  ;;  %v84_v21 = vld [vmem:[%s3117_s0 + $0x1c0] sm:$0xff] }
  0x29   :  { %2344 = vmatpush3.bf16.msra.mxu1 %v2508_v63  ;;  %v82_v18 = vld [vmem:[%s3117_s0 + $0x1b0] sm:$0xff]  ;;  %v55_v20 = vld [vmem:[%s3117_s0 + $0xd8] sm:$0xff]  ;;  %v85_v22 = vld [vmem:[%s3117_s0 + $0x1c8] sm:$0xff] }
  0x2a   :  { %2288 = vmatmul.mubr.msk.bf16.gmra.mrb[16].mxu0 %vm147_vm0, %v101_v0  ;;  %2345 = vmatprep.subr.bf16.mxu1 %v2509_v3  ;;  %v56_v23 = vld [vmem:[%s3117_s0 + $0xe0] sm:$0xff]  ;;  %v57_v24 = vld [vmem:[%s3117_s0 + $0xe8] sm:$0xff]  ;;  %v119_v25 = vpack.c.bf16 %v83_v19, %v82_v18  ;;  %v105_v26 = vpack.c.bf16 %v55_v20, %v54_v17  ;;  %v120_v27 = vpack.c.bf16 %v85_v22, %v84_v21  ;;  %v58_v29 = vld [vmem:[%s3117_s0 + $0xf0] sm:$0xff] }
  0x2b   :  { %2291 = vmatprep.mubr.msk.bf16.mxu0 %vm147_vm0, %v102_v2  ;;  %v106_v28 = vpack.c.bf16 %v57_v24, %v56_v23  ;;  %v86_v30 = vld [vmem:[%s3117_s0 + $0x1d0] sm:$0xff]  ;;  %v87_v31 = vld [vmem:[%s3117_s0 + $0x1d8] sm:$0xff]  ;;  %v88_v33 = vld [vmem:[%s3117_s0 + $0x1e0] sm:$0xff] }
  0x2c   :  { %v59_v32 = vld [vmem:[%s3117_s0 + $0xf8] sm:$0xff]  ;;  %v89_v34 = vld [vmem:[%s3117_s0 + $0x1e8] sm:$0xff]  ;;  %v121_v35 = vpack.c.bf16 %v87_v31, %v86_v30  ;;  %v90_v38 = vld [vmem:[%s3117_s0 + $0x1f0] sm:$0xff] }
  0x2d   :  { %2346 = vmatpush3.bf16.msra.mxu1 %v2509_v3  ;;  %v107_v36 = vpack.c.bf16 %v59_v32, %v58_v29  ;;  %v122_v37 = vpack.c.bf16 %v89_v34, %v88_v33  ;;  %v91_v39 = vld [vmem:[%s3117_s0 + $0x1f8] sm:$0xff]  ;;  %v2844_v42 = vld [vmem:[%s3119_s2] ss:$0 sm:$0xff]  ;;  %v2513_v51 = vld [vmem:[%s3122_s5 + $0x8] sm:$0xff]  }
  0x2e   :  { %2320 = vmatmul.mubr.msk.bf16.gmra.mrb[16].mxu1 %vm147_vm0, %v117_v12  ;;  %2347 = vmatprep.subr.bf16.mxu1 %v2510_v13  ;;  %v123_v40 = vpack.c.bf16 %v91_v39, %v90_v38  ;;  %v2511_v41 = vld [vmem:[%s3120_s3 + $0x38] sm:$0xff]   ;;  %v2512_v50 = vld [vmem:[%s3122_s5] sm:$0xff]   ;;  %v2514_v59 = vld [vmem:[%s3122_s5 + $0x10] sm:$0xff]  }
  0x2f   :  { %2323 = vmatprep.mubr.msk.bf16.mxu1 %vm147_vm0, %v118_v15  ;;  %2415 = vmatprep.subr.bf16.mxu0 %v2512_v50 }
  0x30   :  { %2416 = vmatpush3.bf16.msra.mxu0 %v2512_v50 }
  0x31   :  { %2348 = vmatpush3.bf16.msra.mxu1 %v2510_v13  ;;  %2417 = vmatprep.subr.bf16.mxu0 %v2513_v51  ;;  %v2515_v13 = vld [vmem:[%s3122_s5 + $0x18] sm:$0xff]  }
  0x32   :  { %2292 = vmatmul.mubr.msk.bf16.gmra.mrb[20].mxu0 %vm147_vm0, %v103_v14  ;;  %2349 = vmatprep.subr.bf16.mxu1 %v2511_v41 }
  0x33   :  { %2295 = vmatprep.mubr.msk.bf16.mxu0 %vm147_vm0, %v104_v16 }
  0x34   :  { %2418 = vmatpush3.bf16.msra.mxu0 %v2513_v51 }
  0x35   :  { %2350 = vmatpush3.bf16.msra.mxu1 %v2511_v41  ;;  %2419 = vmatprep.subr.bf16.mxu0 %v2514_v59 }
  0x36   :  { %2324 = vmatmul.mubr.msk.bf16.gmra.mrb[20].mxu1 %vm147_vm0, %v119_v25  ;;  %v2516_v25 = vld [vmem:[%s3122_s5 + $0x20] sm:$0xff]  }
  0x37   :  { %2327 = vmatprep.mubr.msk.bf16.mxu1 %vm147_vm0, %v120_v27 }
  0x38   :  { %2420 = vmatpush3.bf16.msra.mxu0 %v2514_v59 }
  0x39   :  { %2421 = vmatprep.subr.bf16.mxu0 %v2515_v13 }
  0x3a   :  { %2296 = vmatmul.mubr.msk.bf16.gmra.mrb[24].mxu0 %vm147_vm0, %v105_v26 }
  0x3b   :  { %2299 = vmatprep.mubr.msk.bf16.mxu0 %vm147_vm0, %v106_v28 }
  0x3c   :  { %2422 = vmatpush3.bf16.msra.mxu0 %v2515_v13 }
  0x3d   :  { %2423 = vmatprep.subr.bf16.mxu0 %v2516_v25 }
  0x3e   :  { %2328 = vmatmul.mubr.msk.bf16.gmra.mrb[24].mxu1 %vm147_vm0, %v121_v35 }
  0x3f   :  { %2331 = vmatprep.mubr.msk.bf16.mxu1 %vm147_vm0, %v122_v37 }
  0x40   :  { %2424 = vmatpush3.bf16.msra.mxu0 %v2516_v25 }
  0x42   :  { %2300 = vmatmul.mubr.msk.bf16.gmra.mrb[28].mxu0 %vm147_vm0, %v107_v36 }
  0x46   :  { %2332 = vmatmul.mubr.msk.bf16.gmra.mrb[28].mxu1 %vm147_vm0, %v123_v40 }
  0xdd   :  { %v2273_v43 = vpop.f32.mrb[0].mxu0  ;;  %v2305_v58 = vpop.f32.mrb[0].mxu1 }
  0xde   :  { %v287_v44 = vadd.f32 %v2273_v43, %v2844_v42  ;;  %v278_v45 = vpop.f32.mrb[1].mxu0  ;;  %v415_v62 = vadd.f32 %v2305_v58, %v2844_v42  ;;  %v406_v63 = vpop.f32.mrb[1].mxu1 }
  0xdf   :  { %v279_v46 = vadd.f32 %v2844_v42, %v278_v45  ;;  %v2274_v47 = vpop.f32.mrb[2].mxu0  ;;  %v407_v2 = vadd.f32 %v2844_v42, %v406_v63  ;;  %v2306_v3 = vpop.f32.mrb[2].mxu1 }
  0xe0   :  { %v290_v48 = vadd.f32 %v2274_v47, %v2844_v42  ;;  %v281_v49 = vpop.f32.mrb[3].mxu0  ;;  %v535_v53 = vmax.f32 %v287_v44, 0.0  ;;  %v567_v6 = vmax.f32 %v415_v62, 0.0  ;;  %v418_v7 = vadd.f32 %v2306_v3, %v2844_v42  ;;  %v409_v8 = vpop.f32.mrb[3].mxu1  ;;  %v2517_v44 = vld [vmem:[%s3122_s5 + $0x28] sm:$0xff]  }
  0xe1   :  { %v282_v52 = vadd.f32 %v2844_v42, %v281_v49  ;;  %v533_v55 = vmax.f32 %v279_v46, 0.0  ;;  %v565_v11 = vmax.f32 %v407_v2, 0.0  ;;  %v410_v12 = vadd.f32 %v2844_v42, %v409_v8  ;;  %2425 = vmatprep.subr.bf16.mxu0 %v2517_v44 }
  0xe2   :  { %v536_v54 = vmax.f32 %v290_v48, 0.0  ;;  %v568_v15 = vmax.f32 %v418_v7, 0.0  ;;  %2426 = vmatpush3.bf16.msra.mxu0 %v2517_v44 }
  0xe3   :  { %v534_v56 = vmax.f32 %v282_v52, 0.0  ;;  %v566_v18 = vmax.f32 %v410_v12, 0.0 }
  0xe4   :  { %v598_v57 = vpack.c.bf16 %v536_v54, %v535_v53  ;;  %v2870_v21 = vpack.c.bf16 %v568_v15, %v567_v6 }
  0xe5   :  { %v597_v60 = vpack.c.bf16 %v534_v56, %v533_v55  ;;  %v2277_v61 = vpop.f32.mrb[4].mxu0  ;;  %v2872_v23 = vpack.c.bf16 %v566_v18, %v565_v11  ;;  %v2309_v24 = vpop.f32.mrb[4].mxu1  ;;  %v2518_v56 = vld [vmem:[%s3122_s5 + $0x30] sm:$0xff]  }
  0xe6   :  { %v303_v0 = vadd.f32 %v2277_v61, %v2844_v42  ;;  %v294_v1 = vpop.f32.mrb[5].mxu0  ;;  %v431_v28 = vadd.f32 %v2309_v24, %v2844_v42  ;;  %v422_v29 = vpop.f32.mrb[5].mxu1  ;;  %2427 = vmatprep.subr.bf16.mxu0 %v2518_v56 }
  0xe7   :  { %v295_v4 = vadd.f32 %v2844_v42, %v294_v1  ;;  %v2278_v5 = vpop.f32.mrb[6].mxu0  ;;  %2351 = vmatprep.mubr.bf16.mxu1 %v597_v60  ;;  %v423_v32 = vadd.f32 %v2844_v42, %v422_v29  ;;  %v2310_v33 = vpop.f32.mrb[6].mxu1  ;;  %2428 = vmatpush3.bf16.msra.mxu0 %v2518_v56 }
  0xe8   :  { %v306_v9 = vadd.f32 %v2278_v5, %v2844_v42  ;;  %v297_v10 = vpop.f32.mrb[7].mxu0  ;;  %2352 = vmatmul.mubr.bf16.vlgmr.msra.gmra.mrb[32].mxu1 %v598_v57  ;;  %v539_v16 = vmax.f32 %v303_v0, 0.0  ;;  %v571_v36 = vmax.f32 %v431_v28, 0.0  ;;  %v434_v37 = vadd.f32 %v2310_v33, %v2844_v42  ;;  %v425_v38 = vpop.f32.mrb[7].mxu1 }
  0xe9   :  { %v298_v14 = vadd.f32 %v2844_v42, %v297_v10  ;;  %v537_v19 = vmax.f32 %v295_v4, 0.0  ;;  %v569_v41 = vmax.f32 %v423_v32, 0.0  ;;  %v426_v43 = vadd.f32 %v2844_v42, %v425_v38 }
  0xea   :  { %v540_v17 = vmax.f32 %v306_v9, 0.0  ;;  %v572_v46 = vmax.f32 %v434_v37, 0.0 }
  0xeb   :  { %v538_v20 = vmax.f32 %v298_v14, 0.0  ;;  %v570_v49 = vmax.f32 %v426_v43, 0.0 }
  0xec   :  { %v600_v22 = vpack.c.bf16 %v540_v17, %v539_v16  ;;  %v2888_v52 = vpack.c.bf16 %v572_v46, %v571_v36 }
  0xed   :  { %v599_v26 = vpack.c.bf16 %v538_v20, %v537_v19  ;;  %v2281_v27 = vpop.f32.mrb[8].mxu0  ;;  %v2890_v54 = vpack.c.bf16 %v570_v49, %v569_v41  ;;  %v2313_v55 = vpop.f32.mrb[8].mxu1 }
  0xee   :  { %v319_v30 = vadd.f32 %v2281_v27, %v2844_v42  ;;  %v310_v31 = vpop.f32.mrb[9].mxu0  ;;  %v447_v59 = vadd.f32 %v2313_v55, %v2844_v42  ;;  %v438_v60 = vpop.f32.mrb[9].mxu1 }
  0xef   :  { %v311_v34 = vadd.f32 %v2844_v42, %v310_v31  ;;  %v2282_v35 = vpop.f32.mrb[10].mxu0  ;;  %2355 = vmatprep.mubr.bf16.mxu1 %v599_v26  ;;  %v439_v63 = vadd.f32 %v2844_v42, %v438_v60  ;;  %v2314_v0 = vpop.f32.mrb[10].mxu1 }
  0xf0   :  { %v322_v39 = vadd.f32 %v2282_v35, %v2844_v42  ;;  %v313_v40 = vpop.f32.mrb[11].mxu0  ;;  %2356 = vmatmul.mubr.bf16.gmra.mrb[36].mxu1 %v600_v22  ;;  %v543_v47 = vmax.f32 %v319_v30, 0.0  ;;  %v575_v3 = vmax.f32 %v447_v59, 0.0  ;;  %v450_v4 = vadd.f32 %v2314_v0, %v2844_v42  ;;  %v441_v5 = vpop.f32.mrb[11].mxu1 }
  0xf1   :  { %v314_v45 = vadd.f32 %v2844_v42, %v313_v40  ;;  %v541_v50 = vmax.f32 %v311_v34, 0.0  ;;  %v573_v8 = vmax.f32 %v439_v63, 0.0  ;;  %v442_v9 = vadd.f32 %v2844_v42, %v441_v5 }
  0xf2   :  { %v544_v48 = vmax.f32 %v322_v39, 0.0  ;;  %v576_v11 = vmax.f32 %v450_v4, 0.0 }
  0xf3   :  { %v542_v51 = vmax.f32 %v314_v45, 0.0  ;;  %v574_v14 = vmax.f32 %v442_v9, 0.0 }
  0xf4   :  { %v602_v53 = vpack.c.bf16 %v544_v48, %v543_v47  ;;  %v2903_v17 = vpack.c.bf16 %v576_v11, %v575_v3 }
  0xf5   :  { %v601_v57 = vpack.c.bf16 %v542_v51, %v541_v50  ;;  %v2285_v58 = vpop.f32.mrb[12].mxu0  ;;  %v2905_v19 = vpack.c.bf16 %v574_v14, %v573_v8 }
  0xf6   :  { %v335_v61 = vadd.f32 %v2285_v58, %v2844_v42  ;;  %v326_v62 = vpop.f32.mrb[13].mxu0 }
  0xf7   :  { %v327_v1 = vadd.f32 %v2844_v42, %v326_v62  ;;  %v2286_v2 = vpop.f32.mrb[14].mxu0  ;;  %2359 = vmatprep.mubr.bf16.mxu1 %v601_v57 }
  0xf8   :  { %v338_v6 = vadd.f32 %v2286_v2, %v2844_v42  ;;  %v329_v7 = vpop.f32.mrb[15].mxu0  ;;  %2360 = vmatmul.mubr.bf16.gmra.mrb[40].mxu1 %v602_v53  ;;  %v547_v12 = vmax.f32 %v335_v61, 0.0 }
  0xf9   :  { %v330_v10 = vadd.f32 %v2844_v42, %v329_v7  ;;  %v545_v15 = vmax.f32 %v327_v1, 0.0  ;;  %v2317_v20 = vpop.f32.mrb[12].mxu1 }
  0xfa   :  { %v548_v13 = vmax.f32 %v338_v6, 0.0  ;;  %v463_v25 = vadd.f32 %v2317_v20, %v2844_v42  ;;  %v454_v26 = vpop.f32.mrb[13].mxu1 }
  0xfb   :  { %v546_v16 = vmax.f32 %v330_v10, 0.0  ;;  %v455_v29 = vadd.f32 %v2844_v42, %v454_v26  ;;  %v2318_v30 = vpop.f32.mrb[14].mxu1 }
  0xfc   :  { %v604_v18 = vpack.c.bf16 %v548_v13, %v547_v12  ;;  %v579_v33 = vmax.f32 %v463_v25, 0.0  ;;  %v466_v34 = vadd.f32 %v2318_v30, %v2844_v42  ;;  %v457_v35 = vpop.f32.mrb[15].mxu1 }
  0xfd   :  { %v603_v22 = vpack.c.bf16 %v546_v16, %v545_v15  ;;  %v2289_v24 = vpop.f32.mrb[16].mxu0  ;;  %v577_v38 = vmax.f32 %v455_v29, 0.0  ;;  %v458_v39 = vadd.f32 %v2844_v42, %v457_v35 }
  0xfe   :  { %v351_v27 = vadd.f32 %v2289_v24, %v2844_v42  ;;  %v342_v28 = vpop.f32.mrb[17].mxu0  ;;  %v580_v41 = vmax.f32 %v466_v34, 0.0 }
  0xff   :  { %v343_v31 = vadd.f32 %v2844_v42, %v342_v28  ;;  %v2290_v32 = vpop.f32.mrb[18].mxu0  ;;  %2363 = vmatprep.mubr.bf16.mxu1 %v603_v22  ;;  %v578_v45 = vmax.f32 %v458_v39, 0.0 }
 0x100   :  { %v354_v36 = vadd.f32 %v2290_v32, %v2844_v42  ;;  %v345_v37 = vpop.f32.mrb[19].mxu0  ;;  %2364 = vmatmul.mubr.bf16.gmra.mrb[44].mxu1 %v604_v18  ;;  %v551_v43 = vmax.f32 %v351_v27, 0.0  ;;  %v2915_v48 = vpack.c.bf16 %v580_v41, %v579_v33 }
 0x101   :  { %v346_v40 = vadd.f32 %v2844_v42, %v345_v37  ;;  %v549_v46 = vmax.f32 %v343_v31, 0.0  ;;  %v2917_v50 = vpack.c.bf16 %v578_v45, %v577_v38  ;;  %v2321_v51 = vpop.f32.mrb[16].mxu1 }
 0x102   :  { %v552_v44 = vmax.f32 %v354_v36, 0.0  ;;  %v479_v56 = vadd.f32 %v2321_v51, %v2844_v42  ;;  %v470_v57 = vpop.f32.mrb[17].mxu1 }
 0x103   :  { %v550_v47 = vmax.f32 %v346_v40, 0.0  ;;  %v471_v60 = vadd.f32 %v2844_v42, %v470_v57  ;;  %v2322_v61 = vpop.f32.mrb[18].mxu1 }
 0x104   :  { %v606_v49 = vpack.c.bf16 %v552_v44, %v551_v43  ;;  %v583_v0 = vmax.f32 %v479_v56, 0.0  ;;  %v482_v1 = vadd.f32 %v2322_v61, %v2844_v42  ;;  %v473_v2 = vpop.f32.mrb[19].mxu1 }
 0x105   :  { %v605_v53 = vpack.c.bf16 %v550_v47, %v549_v46  ;;  %v2293_v55 = vpop.f32.mrb[20].mxu0  ;;  %v581_v5 = vmax.f32 %v471_v60, 0.0  ;;  %v474_v6 = vadd.f32 %v2844_v42, %v473_v2 }
 0x106   :  { %v367_v58 = vadd.f32 %v2293_v55, %v2844_v42  ;;  %v358_v59 = vpop.f32.mrb[21].mxu0  ;;  %v584_v8 = vmax.f32 %v482_v1, 0.0 }
 0x107   :  { %v359_v62 = vadd.f32 %v2844_v42, %v358_v59  ;;  %v2294_v63 = vpop.f32.mrb[22].mxu0  ;;  %2367 = vmatprep.mubr.bf16.mxu1 %v605_v53  ;;  %v582_v11 = vmax.f32 %v474_v6, 0.0 }
 0x108   :  { %v370_v3 = vadd.f32 %v2294_v63, %v2844_v42  ;;  %v361_v4 = vpop.f32.mrb[23].mxu0  ;;  %2368 = vmatmul.mubr.bf16.gmra.mrb[48].mxu1 %v606_v49  ;;  %v555_v9 = vmax.f32 %v367_v58, 0.0  ;;  %v2927_v14 = vpack.c.bf16 %v584_v8, %v583_v0 }
 0x109   :  { %v362_v7 = vadd.f32 %v2844_v42, %v361_v4  ;;  %v553_v12 = vmax.f32 %v359_v62, 0.0  ;;  %v2929_v16 = vpack.c.bf16 %v582_v11, %v581_v5  ;;  %v2325_v18 = vpop.f32.mrb[20].mxu1 }
 0x10a   :  { %v556_v10 = vmax.f32 %v370_v3, 0.0  ;;  %v495_v24 = vadd.f32 %v2325_v18, %v2844_v42  ;;  %v486_v25 = vpop.f32.mrb[21].mxu1 }
 0x10b   :  { %v554_v13 = vmax.f32 %v362_v7, 0.0  ;;  %v487_v28 = vadd.f32 %v2844_v42, %v486_v25  ;;  %v2326_v29 = vpop.f32.mrb[22].mxu1 }
 0x10c   :  { %v608_v15 = vpack.c.bf16 %v556_v10, %v555_v9  ;;  %v587_v32 = vmax.f32 %v495_v24, 0.0  ;;  %v498_v33 = vadd.f32 %v2326_v29, %v2844_v42  ;;  %v489_v34 = vpop.f32.mrb[23].mxu1 }
 0x10d   :  { %v607_v20 = vpack.c.bf16 %v554_v13, %v553_v12  ;;  %v2297_v22 = vpop.f32.mrb[24].mxu0  ;;  %v585_v37 = vmax.f32 %v487_v28, 0.0  ;;  %v490_v38 = vadd.f32 %v2844_v42, %v489_v34 }
 0x10e   :  { %v383_v26 = vadd.f32 %v2297_v22, %v2844_v42  ;;  %v374_v27 = vpop.f32.mrb[25].mxu0  ;;  %v588_v40 = vmax.f32 %v498_v33, 0.0 }
 0x10f   :  { %v375_v30 = vadd.f32 %v2844_v42, %v374_v27  ;;  %v2298_v31 = vpop.f32.mrb[26].mxu0  ;;  %2371 = vmatprep.mubr.bf16.mxu1 %v607_v20  ;;  %v586_v44 = vmax.f32 %v490_v38, 0.0 }
 0x110   :  { %v386_v35 = vadd.f32 %v2298_v31, %v2844_v42  ;;  %v377_v36 = vpop.f32.mrb[27].mxu0  ;;  %2372 = vmatmul.mubr.bf16.gmra.mrb[52].mxu1 %v608_v15  ;;  %v559_v41 = vmax.f32 %v383_v26, 0.0  ;;  %v2939_v47 = vpack.c.bf16 %v588_v40, %v587_v32 }
 0x111   :  { %v378_v39 = vadd.f32 %v2844_v42, %v377_v36  ;;  %v557_v45 = vmax.f32 %v375_v30, 0.0  ;;  %v623_v51 = vpack.c.bf16 %v586_v44, %v585_v37  ;;  %v2329_v53 = vpop.f32.mrb[24].mxu1 }
 0x112   :  { %v560_v43 = vmax.f32 %v386_v35, 0.0  ;;  %v511_v57 = vadd.f32 %v2329_v53, %v2844_v42  ;;  %v502_v58 = vpop.f32.mrb[25].mxu1 }
 0x113   :  { %v558_v46 = vmax.f32 %v378_v39, 0.0  ;;  %v503_v61 = vadd.f32 %v2844_v42, %v502_v58  ;;  %v2330_v62 = vpop.f32.mrb[26].mxu1 }
 0x114   :  { %v610_v49 = vpack.c.bf16 %v560_v43, %v559_v41  ;;  %v591_v1 = vmax.f32 %v511_v57, 0.0  ;;  %v514_v2 = vadd.f32 %v2330_v62, %v2844_v42  ;;  %v505_v3 = vpop.f32.mrb[27].mxu1 }
 0x115   :  { %v609_v55 = vpack.c.bf16 %v558_v46, %v557_v45  ;;  %v2301_v56 = vpop.f32.mrb[28].mxu0  ;;  %v589_v6 = vmax.f32 %v503_v61, 0.0  ;;  %v506_v7 = vadd.f32 %v2844_v42, %v505_v3 }
 0x116   :  { %v399_v59 = vadd.f32 %v2301_v56, %v2844_v42  ;;  %v390_v60 = vpop.f32.mrb[29].mxu0  ;;  %v592_v9 = vmax.f32 %v514_v2, 0.0 }
 0x117   :  { %v391_v63 = vadd.f32 %v2844_v42, %v390_v60  ;;  %v2302_v0 = vpop.f32.mrb[30].mxu0  ;;  %2375 = vmatprep.mubr.bf16.mxu1 %v609_v55  ;;  %v590_v12 = vmax.f32 %v506_v7, 0.0 }
 0x118   :  { %v402_v4 = vadd.f32 %v2302_v0, %v2844_v42  ;;  %v393_v5 = vpop.f32.mrb[31].mxu0  ;;  %2376 = vmatmul.mubr.bf16.gmra.mrb[56].mxu1 %v610_v49  ;;  %v563_v10 = vmax.f32 %v399_v59, 0.0  ;;  %v626_v18 = vpack.c.bf16 %v592_v9, %v591_v1 }
 0x119   :  { %v394_v8 = vadd.f32 %v2844_v42, %v393_v5  ;;  %v561_v13 = vmax.f32 %v391_v63, 0.0  ;;  %v625_v22 = vpack.c.bf16 %v590_v12, %v589_v6  ;;  %v2333_v24 = vpop.f32.mrb[28].mxu1 }
 0x11a   :  { %v564_v11 = vmax.f32 %v402_v4, 0.0  ;;  %v527_v26 = vadd.f32 %v2333_v24, %v2844_v42  ;;  %v518_v27 = vpop.f32.mrb[29].mxu1 }
 0x11b   :  { %v562_v15 = vmax.f32 %v394_v8, 0.0  ;;  %v519_v28 = vadd.f32 %v2844_v42, %v518_v27  ;;  %v2334_v29 = vpop.f32.mrb[30].mxu1 }
 0x11c   :  { %v612_v20 = vpack.c.bf16 %v564_v11, %v563_v10  ;;  %v595_v30 = vmax.f32 %v527_v26, 0.0  ;;  %v530_v31 = vadd.f32 %v2334_v29, %v2844_v42  ;;  %v521_v32 = vpop.f32.mrb[31].mxu1 }
 0x11d   :  { %v611_v25 = vpack.c.bf16 %v562_v15, %v561_v13  ;;  %v593_v33 = vmax.f32 %v519_v28, 0.0  ;;  %v522_v34 = vadd.f32 %v2844_v42, %v521_v32  ;;  %v2519_v42 = vld [vmem:[%s3122_s5 + $0x38] sm:$0xff]  }
 0x11e   :  { %v596_v35 = vmax.f32 %v530_v31, 0.0  ;;  %2429 = vmatprep.subr.bf16.mxu0 %v2519_v42 }
 0x11f   :  { %2379 = vmatprep.mubr.bf16.mxu1 %v611_v25  ;;  %v594_v36 = vmax.f32 %v522_v34, 0.0  ;;  %2430 = vmatpush3.bf16.msra.mxu0 %v2519_v42 }
 0x120   :  { %2380 = vmatmul.mubr.bf16.gmra.mrb[60].mxu1 %v612_v20  ;;  %v628_v37 = vpack.c.bf16 %v596_v35, %v595_v30 }
 0x121   :  { %2383 = vmatprep.mubr.bf16.mxu1 %v2872_v23  ;;  %v627_v38 = vpack.c.bf16 %v594_v36, %v593_v33 }
 0x128   :  { %2384 = vmatmul.mubr.bf16.gmra.mrb[64].mxu1 %v2870_v21  ;;  %v2970_v21 = vld [vmem:[%s3121_s4] ss:$0 sm:$0xff] }
 0x129   :  { %2387 = vmatprep.mubr.bf16.mxu1 %v2890_v54 }
 0x130   :  { %2388 = vmatmul.mubr.bf16.gmra.mrb[68].mxu1 %v2888_v52 }
 0x131   :  { %2391 = vmatprep.mubr.bf16.mxu1 %v2905_v19 }
 0x138   :  { %2392 = vmatmul.mubr.bf16.gmra.mrb[72].mxu1 %v2903_v17 }
 0x139   :  { %2395 = vmatprep.mubr.bf16.mxu1 %v2917_v50 }
 0x140   :  { %2396 = vmatmul.mubr.bf16.gmra.mrb[76].mxu1 %v2915_v48 }
 0x141   :  { %2399 = vmatprep.mubr.bf16.mxu1 %v2929_v16 }
 0x148   :  { %2400 = vmatmul.mubr.bf16.gmra.mrb[80].mxu1 %v2927_v14 }
 0x149   :  { %2403 = vmatprep.mubr.bf16.mxu1 %v623_v51 }
 0x150   :  { %2404 = vmatmul.mubr.bf16.gmra.mrb[84].mxu1 %v2939_v47 }
 0x151   :  { %2407 = vmatprep.mubr.bf16.mxu1 %v625_v22 }
 0x158   :  { %2408 = vmatmul.mubr.bf16.gmra.mrb[88].mxu1 %v626_v18 }
 0x159   :  { %2411 = vmatprep.mubr.bf16.mxu1 %v627_v38 }
 0x160   :  { %2412 = vmatmul.mubr.bf16.gmra.mrb[92].mxu1 %v628_v37 }
 0x1bb   :  { %v2353_v23 = vpop.f32.mrb[32].mxu1 }
 0x1bc   :  { %v743_v52 = vadd.f32 %v2353_v23, %v2970_v21  ;;  %v734_v54 = vpop.f32.mrb[33].mxu1 }
 0x1bd   :  { %v735_v17 = vadd.f32 %v2970_v21, %v734_v54  ;;  %v2354_v19 = vpop.f32.mrb[34].mxu1 }
 0x1be   :  { %v746_v48 = vadd.f32 %v2354_v19, %v2970_v21  ;;  %v737_v50 = vpop.f32.mrb[35].mxu1  ;;  %v991_v16 = vmax.f32 %v743_v52, 0.0 }
 0x1bf   :  { %v738_v14 = vadd.f32 %v2970_v21, %v737_v50  ;;  %v989_v40 = vmax.f32 %v735_v17, 0.0 }
 0x1c0   :  { %v992_v39 = vmax.f32 %v746_v48, 0.0 }
 0x1c1   :  { %v990_v41 = vmax.f32 %v738_v14, 0.0 }
 0x1c2   :  { %v1054_v43 = vpack.c.bf16 %v992_v39, %v991_v16 }
 0x1c3   :  { %v1053_v44 = vpack.c.bf16 %v990_v41, %v989_v40  ;;  %v2357_v45 = vpop.f32.mrb[36].mxu1 }
 0x1c4   :  { %v759_v46 = vadd.f32 %v2357_v45, %v2970_v21  ;;  %v750_v47 = vpop.f32.mrb[37].mxu1 }
 0x1c5   :  { %v751_v49 = vadd.f32 %v2970_v21, %v750_v47  ;;  %v2358_v51 = vpop.f32.mrb[38].mxu1  ;;  %2431 = vmatprep.mubr.bf16.mxu0 %v1053_v44 }
 0x1c6   :  { %v762_v53 = vadd.f32 %v2358_v51, %v2970_v21  ;;  %v753_v55 = vpop.f32.mrb[39].mxu1  ;;  %2432 = vmatmul.mubr.bf16.vlgmr.msra.gmra.mrb[32].mxu0 %v1054_v43  ;;  %v995_v57 = vmax.f32 %v759_v46, 0.0 }
 0x1c7   :  { %v754_v56 = vadd.f32 %v2970_v21, %v753_v55  ;;  %v993_v59 = vmax.f32 %v751_v49, 0.0 }
 0x1c8   :  { %v996_v58 = vmax.f32 %v762_v53, 0.0 }
 0x1c9   :  { %v994_v60 = vmax.f32 %v754_v56, 0.0 }
 0x1ca   :  { %v1056_v61 = vpack.c.bf16 %v996_v58, %v995_v57 }
 0x1cb   :  { %v1055_v62 = vpack.c.bf16 %v994_v60, %v993_v59  ;;  %v2361_v63 = vpop.f32.mrb[40].mxu1 }
 0x1cc   :  { %v775_v0 = vadd.f32 %v2361_v63, %v2970_v21  ;;  %v766_v1 = vpop.f32.mrb[41].mxu1 }
 0x1cd   :  { %v767_v2 = vadd.f32 %v2970_v21, %v766_v1  ;;  %v2362_v3 = vpop.f32.mrb[42].mxu1  ;;  %2435 = vmatprep.mubr.bf16.mxu0 %v1055_v62 }
 0x1ce   :  { %v778_v4 = vadd.f32 %v2362_v3, %v2970_v21  ;;  %v769_v5 = vpop.f32.mrb[43].mxu1  ;;  %2436 = vmatmul.mubr.bf16.gmra.mrb[36].mxu0 %v1056_v61  ;;  %v999_v7 = vmax.f32 %v775_v0, 0.0 }
 0x1cf   :  { %v770_v6 = vadd.f32 %v2970_v21, %v769_v5  ;;  %v997_v9 = vmax.f32 %v767_v2, 0.0 }
 0x1d0   :  { %v1000_v8 = vmax.f32 %v778_v4, 0.0 }
 0x1d1   :  { %v998_v10 = vmax.f32 %v770_v6, 0.0 }
 0x1d2   :  { %v1058_v11 = vpack.c.bf16 %v1000_v8, %v999_v7 }
 0x1d3   :  { %v1057_v12 = vpack.c.bf16 %v998_v10, %v997_v9  ;;  %v2365_v13 = vpop.f32.mrb[44].mxu1 }
 0x1d4   :  { %v791_v15 = vadd.f32 %v2365_v13, %v2970_v21  ;;  %v782_v18 = vpop.f32.mrb[45].mxu1 }
 0x1d5   :  { %v783_v20 = vadd.f32 %v2970_v21, %v782_v18  ;;  %v2366_v22 = vpop.f32.mrb[46].mxu1  ;;  %2439 = vmatprep.mubr.bf16.mxu0 %v1057_v12 }
 0x1d6   :  { %v794_v24 = vadd.f32 %v2366_v22, %v2970_v21  ;;  %v785_v25 = vpop.f32.mrb[47].mxu1  ;;  %2440 = vmatmul.mubr.bf16.gmra.mrb[40].mxu0 %v1058_v11  ;;  %v1003_v27 = vmax.f32 %v791_v15, 0.0 }
 0x1d7   :  { %v786_v26 = vadd.f32 %v2970_v21, %v785_v25  ;;  %v1001_v29 = vmax.f32 %v783_v20, 0.0 }
 0x1d8   :  { %v1004_v28 = vmax.f32 %v794_v24, 0.0 }
 0x1d9   :  { %v1002_v30 = vmax.f32 %v786_v26, 0.0 }
 0x1da   :  { %v1060_v31 = vpack.c.bf16 %v1004_v28, %v1003_v27 }
 0x1db   :  { %v1059_v32 = vpack.c.bf16 %v1002_v30, %v1001_v29  ;;  %v2369_v33 = vpop.f32.mrb[48].mxu1 }
 0x1dc   :  { %v807_v34 = vadd.f32 %v2369_v33, %v2970_v21  ;;  %v798_v35 = vpop.f32.mrb[49].mxu1 }
 0x1dd   :  { %v799_v36 = vadd.f32 %v2970_v21, %v798_v35  ;;  %v2370_v37 = vpop.f32.mrb[50].mxu1  ;;  %2443 = vmatprep.mubr.bf16.mxu0 %v1059_v32 }
 0x1de   :  { %v810_v38 = vadd.f32 %v2370_v37, %v2970_v21  ;;  %v801_v42 = vpop.f32.mrb[51].mxu1  ;;  %2444 = vmatmul.mubr.bf16.gmra.mrb[44].mxu0 %v1060_v31  ;;  %v1007_v52 = vmax.f32 %v807_v34, 0.0 }
 0x1df   :  { %v802_v23 = vadd.f32 %v2970_v21, %v801_v42  ;;  %v1005_v17 = vmax.f32 %v799_v36, 0.0 }
 0x1e0   :  { %v1008_v54 = vmax.f32 %v810_v38, 0.0 }
 0x1e1   :  { %v1006_v19 = vmax.f32 %v802_v23, 0.0 }
 0x1e2   :  { %v1062_v48 = vpack.c.bf16 %v1008_v54, %v1007_v52 }
 0x1e3   :  { %v1061_v50 = vpack.c.bf16 %v1006_v19, %v1005_v17  ;;  %v2373_v14 = vpop.f32.mrb[52].mxu1 }
 0x1e4   :  { %v823_v16 = vadd.f32 %v2373_v14, %v2970_v21  ;;  %v814_v39 = vpop.f32.mrb[53].mxu1 }
 0x1e5   :  { %v815_v40 = vadd.f32 %v2970_v21, %v814_v39  ;;  %v2374_v41 = vpop.f32.mrb[54].mxu1  ;;  %2447 = vmatprep.mubr.bf16.mxu0 %v1061_v50 }
 0x1e6   :  { %v826_v43 = vadd.f32 %v2374_v41, %v2970_v21  ;;  %v817_v44 = vpop.f32.mrb[55].mxu1  ;;  %2448 = vmatmul.mubr.bf16.gmra.mrb[48].mxu0 %v1062_v48  ;;  %v1011_v46 = vmax.f32 %v823_v16, 0.0 }
 0x1e7   :  { %v818_v45 = vadd.f32 %v2970_v21, %v817_v44  ;;  %v1009_v49 = vmax.f32 %v815_v40, 0.0 }
 0x1e8   :  { %v1012_v47 = vmax.f32 %v826_v43, 0.0 }
 0x1e9   :  { %v1010_v51 = vmax.f32 %v818_v45, 0.0 }
 0x1ea   :  { %v1064_v53 = vpack.c.bf16 %v1012_v47, %v1011_v46 }
 0x1eb   :  { %v1063_v55 = vpack.c.bf16 %v1010_v51, %v1009_v49  ;;  %v2377_v56 = vpop.f32.mrb[56].mxu1 }
 0x1ec   :  { %v839_v57 = vadd.f32 %v2377_v56, %v2970_v21  ;;  %v830_v58 = vpop.f32.mrb[57].mxu1 }
 0x1ed   :  { %v831_v59 = vadd.f32 %v2970_v21, %v830_v58  ;;  %v2378_v60 = vpop.f32.mrb[58].mxu1  ;;  %2451 = vmatprep.mubr.bf16.mxu0 %v1063_v55 }
 0x1ee   :  { %v842_v61 = vadd.f32 %v2378_v60, %v2970_v21  ;;  %v833_v62 = vpop.f32.mrb[59].mxu1  ;;  %2452 = vmatmul.mubr.bf16.gmra.mrb[52].mxu0 %v1064_v53  ;;  %v1015_v0 = vmax.f32 %v839_v57, 0.0 }
 0x1ef   :  { %v834_v63 = vadd.f32 %v2970_v21, %v833_v62  ;;  %v1013_v2 = vmax.f32 %v831_v59, 0.0 }
 0x1f0   :  { %v1016_v1 = vmax.f32 %v842_v61, 0.0 }
 0x1f1   :  { %v1014_v3 = vmax.f32 %v834_v63, 0.0 }
 0x1f2   :  { %v1066_v4 = vpack.c.bf16 %v1016_v1, %v1015_v0 }
 0x1f3   :  { %v1065_v5 = vpack.c.bf16 %v1014_v3, %v1013_v2  ;;  %v2381_v6 = vpop.f32.mrb[60].mxu1 }
 0x1f4   :  { %v855_v7 = vadd.f32 %v2381_v6, %v2970_v21  ;;  %v846_v8 = vpop.f32.mrb[61].mxu1 }
 0x1f5   :  { %v847_v9 = vadd.f32 %v2970_v21, %v846_v8  ;;  %v2382_v10 = vpop.f32.mrb[62].mxu1  ;;  %2455 = vmatprep.mubr.bf16.mxu0 %v1065_v5 }
 0x1f6   :  { %v858_v11 = vadd.f32 %v2382_v10, %v2970_v21  ;;  %v849_v12 = vpop.f32.mrb[63].mxu1  ;;  %2456 = vmatmul.mubr.bf16.gmra.mrb[56].mxu0 %v1066_v4  ;;  %v1019_v15 = vmax.f32 %v855_v7, 0.0 }
 0x1f7   :  { %v850_v13 = vadd.f32 %v2970_v21, %v849_v12  ;;  %v1017_v20 = vmax.f32 %v847_v9, 0.0 }
 0x1f8   :  { %v1020_v18 = vmax.f32 %v858_v11, 0.0 }
 0x1f9   :  { %v1018_v22 = vmax.f32 %v850_v13, 0.0 }
 0x1fa   :  { %v1068_v24 = vpack.c.bf16 %v1020_v18, %v1019_v15 }
 0x1fb   :  { %v1067_v25 = vpack.c.bf16 %v1018_v22, %v1017_v20  ;;  %v2385_v26 = vpop.f32.mrb[64].mxu1 }
 0x1fc   :  { %v871_v27 = vadd.f32 %v2385_v26, %v2970_v21  ;;  %v862_v28 = vpop.f32.mrb[65].mxu1 }
 0x1fd   :  { %v863_v29 = vadd.f32 %v2970_v21, %v862_v28  ;;  %v2386_v30 = vpop.f32.mrb[66].mxu1  ;;  %2459 = vmatprep.mubr.bf16.mxu0 %v1067_v25 }
 0x1fe   :  { %v874_v31 = vadd.f32 %v2386_v30, %v2970_v21  ;;  %v865_v32 = vpop.f32.mrb[67].mxu1  ;;  %2460 = vmatmul.mubr.bf16.gmra.mrb[60].mxu0 %v1068_v24  ;;  %v1023_v34 = vmax.f32 %v871_v27, 0.0 }
 0x1ff   :  { %v866_v33 = vadd.f32 %v2970_v21, %v865_v32  ;;  %v1021_v36 = vmax.f32 %v863_v29, 0.0 }
 0x200   :  { %v1024_v35 = vmax.f32 %v874_v31, 0.0 }
 0x201   :  { %v1022_v37 = vmax.f32 %v866_v33, 0.0 }
 0x202   :  { %v1070_v38 = vpack.c.bf16 %v1024_v35, %v1023_v34 }
 0x203   :  { %v1069_v42 = vpack.c.bf16 %v1022_v37, %v1021_v36  ;;  %v2389_v23 = vpop.f32.mrb[68].mxu1 }
 0x204   :  { %v887_v52 = vadd.f32 %v2389_v23, %v2970_v21  ;;  %v878_v54 = vpop.f32.mrb[69].mxu1 }
 0x205   :  { %v879_v17 = vadd.f32 %v2970_v21, %v878_v54  ;;  %v2390_v19 = vpop.f32.mrb[70].mxu1  ;;  %2463 = vmatprep.mubr.bf16.mxu0 %v1069_v42 }
 0x206   :  { %v890_v48 = vadd.f32 %v2390_v19, %v2970_v21  ;;  %v881_v50 = vpop.f32.mrb[71].mxu1  ;;  %2464 = vmatmul.mubr.bf16.gmra.mrb[64].mxu0 %v1070_v38  ;;  %v1027_v16 = vmax.f32 %v887_v52, 0.0 }
 0x207   :  { %v882_v14 = vadd.f32 %v2970_v21, %v881_v50  ;;  %v1025_v40 = vmax.f32 %v879_v17, 0.0 }
 0x208   :  { %v1028_v39 = vmax.f32 %v890_v48, 0.0 }
 0x209   :  { %v1026_v41 = vmax.f32 %v882_v14, 0.0 }
 0x20a   :  { %v1072_v43 = vpack.c.bf16 %v1028_v39, %v1027_v16 }
 0x20b   :  { %v1071_v44 = vpack.c.bf16 %v1026_v41, %v1025_v40  ;;  %v2393_v45 = vpop.f32.mrb[72].mxu1 }
 0x20c   :  { %v903_v46 = vadd.f32 %v2393_v45, %v2970_v21  ;;  %v894_v47 = vpop.f32.mrb[73].mxu1 }
 0x20d   :  { %v895_v49 = vadd.f32 %v2970_v21, %v894_v47  ;;  %v2394_v51 = vpop.f32.mrb[74].mxu1  ;;  %2467 = vmatprep.mubr.bf16.mxu0 %v1071_v44 }
 0x20e   :  { %v906_v53 = vadd.f32 %v2394_v51, %v2970_v21  ;;  %v897_v55 = vpop.f32.mrb[75].mxu1  ;;  %2468 = vmatmul.mubr.bf16.gmra.mrb[68].mxu0 %v1072_v43  ;;  %v1031_v57 = vmax.f32 %v903_v46, 0.0 }
 0x20f   :  { %v898_v56 = vadd.f32 %v2970_v21, %v897_v55  ;;  %v1029_v59 = vmax.f32 %v895_v49, 0.0 }
 0x210   :  { %v1032_v58 = vmax.f32 %v906_v53, 0.0 }
 0x211   :  { %v1030_v60 = vmax.f32 %v898_v56, 0.0 }
 0x212   :  { %v1074_v61 = vpack.c.bf16 %v1032_v58, %v1031_v57 }
 0x213   :  { %v1073_v62 = vpack.c.bf16 %v1030_v60, %v1029_v59  ;;  %v2397_v63 = vpop.f32.mrb[76].mxu1 }
 0x214   :  { %v919_v0 = vadd.f32 %v2397_v63, %v2970_v21  ;;  %v910_v1 = vpop.f32.mrb[77].mxu1 }
 0x215   :  { %v911_v2 = vadd.f32 %v2970_v21, %v910_v1  ;;  %v2398_v3 = vpop.f32.mrb[78].mxu1  ;;  %2471 = vmatprep.mubr.bf16.mxu0 %v1073_v62 }
 0x216   :  { %v922_v4 = vadd.f32 %v2398_v3, %v2970_v21  ;;  %v913_v5 = vpop.f32.mrb[79].mxu1  ;;  %2472 = vmatmul.mubr.bf16.gmra.mrb[72].mxu0 %v1074_v61  ;;  %v1035_v7 = vmax.f32 %v919_v0, 0.0 }
 0x217   :  { %v914_v6 = vadd.f32 %v2970_v21, %v913_v5  ;;  %v1033_v9 = vmax.f32 %v911_v2, 0.0 }
 0x218   :  { %v1036_v8 = vmax.f32 %v922_v4, 0.0 }
 0x219   :  { %v1034_v10 = vmax.f32 %v914_v6, 0.0 }
 0x21a   :  { %v1076_v11 = vpack.c.bf16 %v1036_v8, %v1035_v7  ;;  %v3039_v7 = vld [vmem:[%s3123_s6] ss:$0 sm:$0xff]  ;;  %s2544_s6 = smov [#allocation2]  }
 0x21b   :  { %v1075_v12 = vpack.c.bf16 %v1034_v10, %v1033_v9  ;;  %v2401_v13 = vpop.f32.mrb[80].mxu1  ;;  %s1770_s21 = sshll.u32 %s2544_s6, 4  ;;  %s1771_s21 = int_to_ptr.vmem [resolvable:$true] %s1770_s21 }
 0x21c   :  { %v935_v15 = vadd.f32 %v2401_v13, %v2970_v21  ;;  %v926_v18 = vpop.f32.mrb[81].mxu1  ;;  %s2520_s22 = scalar_lea.vmem %s1771_s21, 4096  ;;  %p2525_p1 = scmp.lt.s32.totalorder %s1771_s21, %s1771_s21 }
 0x21d   :  { %v927_v20 = vadd.f32 %v2970_v21, %v926_v18  ;;  %v2402_v22 = vpop.f32.mrb[82].mxu1  ;;  %2475 = vmatprep.mubr.bf16.mxu0 %v1075_v12  ;;  %p2521_p0 = scmp.ne.s32.totalorder %s1771_s21, %s2520_s22  ;;  %p2526_p2 = scmp.lt.s32.totalorder %s2520_s22, %s2520_s22 }
 0x21e   :  { %v938_v24 = vadd.f32 %v2402_v22, %v2970_v21  ;;  %v929_v25 = vpop.f32.mrb[83].mxu1  ;;  %2476 = vmatmul.mubr.bf16.gmra.mrb[76].mxu0 %v1076_v11  ;;  %v1039_v27 = vmax.f32 %v935_v15, 0.0 }
 0x21f   :  { %v930_v26 = vadd.f32 %v2970_v21, %v929_v25  ;;  %v1037_v29 = vmax.f32 %v927_v20, 0.0  ;;  %p2527_p3 = por %p2526_p2, %p2525_p1 }
 0x220   :  { %v1040_v28 = vmax.f32 %v938_v24, 0.0 }
 0x221   :  { %v1038_v30 = vmax.f32 %v930_v26, 0.0  ;;  %p2528_p4 = pnand %p2527_p3, %p2521_p0 }
 0x222   :  { %v1078_v31 = vpack.c.bf16 %v1040_v28, %v1039_v27 }
 0x223   :  { %v1077_v32 = vpack.c.bf16 %v1038_v30, %v1037_v29  ;;  %v2405_v33 = vpop.f32.mrb[84].mxu1 }
 0x224   :  { %v951_v34 = vadd.f32 %v2405_v33, %v2970_v21  ;;  %v942_v35 = vpop.f32.mrb[85].mxu1 }
 0x225   :  { %v943_v36 = vadd.f32 %v2970_v21, %v942_v35  ;;  %v2406_v37 = vpop.f32.mrb[86].mxu1  ;;  %2479 = vmatprep.mubr.bf16.mxu0 %v1077_v32 }
 0x226   :  { %v954_v38 = vadd.f32 %v2406_v37, %v2970_v21  ;;  %v945_v42 = vpop.f32.mrb[87].mxu1  ;;  %2480 = vmatmul.mubr.bf16.gmra.mrb[80].mxu0 %v1078_v31  ;;  %v1043_v52 = vmax.f32 %v951_v34, 0.0 }
 0x227   :  { %v946_v23 = vadd.f32 %v2970_v21, %v945_v42  ;;  %v1041_v17 = vmax.f32 %v943_v36, 0.0 }
 0x228   :  { %v1044_v54 = vmax.f32 %v954_v38, 0.0 }
 0x229   :  { %v1042_v19 = vmax.f32 %v946_v23, 0.0 }
 0x22a   :  { %v1080_v48 = vpack.c.bf16 %v1044_v54, %v1043_v52 }
 0x22b   :  { %v1079_v50 = vpack.c.bf16 %v1042_v19, %v1041_v17  ;;  %v2409_v14 = vpop.f32.mrb[88].mxu1 }
 0x22c   :  { %v967_v16 = vadd.f32 %v2409_v14, %v2970_v21  ;;  %v958_v39 = vpop.f32.mrb[89].mxu1 }
 0x22d   :  { %v959_v40 = vadd.f32 %v2970_v21, %v958_v39  ;;  %v2410_v41 = vpop.f32.mrb[90].mxu1  ;;  %2483 = vmatprep.mubr.bf16.mxu0 %v1079_v50 }
 0x22e   :  { %v970_v43 = vadd.f32 %v2410_v41, %v2970_v21  ;;  %v961_v44 = vpop.f32.mrb[91].mxu1  ;;  %2484 = vmatmul.mubr.bf16.gmra.mrb[84].mxu0 %v1080_v48  ;;  %v1047_v46 = vmax.f32 %v967_v16, 0.0 }
 0x22f   :  { %v962_v45 = vadd.f32 %v2970_v21, %v961_v44  ;;  %v1045_v49 = vmax.f32 %v959_v40, 0.0 }
 0x230   :  { %v1048_v47 = vmax.f32 %v970_v43, 0.0 }
 0x231   :  { %v1046_v51 = vmax.f32 %v962_v45, 0.0 }
 0x232   :  { %v1082_v53 = vpack.c.bf16 %v1048_v47, %v1047_v46 }
 0x233   :  { %v1081_v55 = vpack.c.bf16 %v1046_v51, %v1045_v49  ;;  %v2413_v56 = vpop.f32.mrb[92].mxu1 }
 0x234   :  { %v983_v57 = vadd.f32 %v2413_v56, %v2970_v21  ;;  %v974_v58 = vpop.f32.mrb[93].mxu1 }
 0x235   :  { %v975_v59 = vadd.f32 %v2970_v21, %v974_v58  ;;  %v2414_v60 = vpop.f32.mrb[94].mxu1  ;;  %2487 = vmatprep.mubr.bf16.mxu0 %v1081_v55 }
 0x236   :  { %v986_v61 = vadd.f32 %v2414_v60, %v2970_v21  ;;  %v977_v62 = vpop.f32.mrb[95].mxu1  ;;  %2488 = vmatmul.mubr.bf16.gmra.mrb[88].mxu0 %v1082_v53  ;;  %v1051_v0 = vmax.f32 %v983_v57, 0.0 }
 0x237   :  { %v978_v63 = vadd.f32 %v2970_v21, %v977_v62  ;;  %v1049_v2 = vmax.f32 %v975_v59, 0.0 }
 0x238   :  { %v1052_v1 = vmax.f32 %v986_v61, 0.0 }
 0x239   :  { %v1050_v3 = vmax.f32 %v978_v63, 0.0 }
 0x23a   :  { %v1084_v4 = vpack.c.bf16 %v1052_v1, %v1051_v0 }
 0x23b   :  { %v1083_v5 = vpack.c.bf16 %v1050_v3, %v1049_v2 }
 0x23d   :  { %2491 = vmatprep.mubr.bf16.mxu0 %v1083_v5 }
 0x23e   :  { %2492 = vmatmul.mubr.bf16.gmra.mrb[92].mxu0 %v1084_v4 }
 0x299   :  { %v2433_v6 = vpop.f32.mrb[32].mxu0 }
 0x29a   :  { %v1190_v8 = vpop.f32.mrb[33].mxu0  ;;  %v1199_v10 = vadd.f32 %v2433_v6, %v3039_v7 }
 0x29b   :  { %v2434_v9 = vpop.f32.mrb[34].mxu0  ;;  %v1191_v12 = vadd.f32 %v3039_v7, %v1190_v8 }
 0x29c   :  { %v1202_v21 = vadd.f32 %v2434_v9, %v3039_v7  ;;  %v1193_v11 = vpop.f32.mrb[35].mxu0 }
 0x29d   :  { %v1194_v13 = vadd.f32 %v3039_v7, %v1193_v11 }
 0x29e   :  { %v1970_v15 = vpack.c.bf16 %v1202_v21, %v1199_v10 }
 0x29f   :  { %v1965_v18 = vpack.c.bf16 %v1194_v13, %v1191_v12 }
 0x2a0   :  { %2122 = vst [vmem:[#allocation2 + $0x8] sm:$0xff] %v1970_v15  }
 0x2a1   :  { %1966 = vst [vmem:[#allocation2] sm:$0xff] %v1965_v18   ;;  %v2437_v20 = vpop.f32.mrb[36].mxu0 }
 0x2a2   :  { %v1206_v22 = vpop.f32.mrb[37].mxu0  ;;  %v1215_v25 = vadd.f32 %v2437_v20, %v3039_v7 }
 0x2a3   :  { %v2438_v24 = vpop.f32.mrb[38].mxu0  ;;  %v1207_v28 = vadd.f32 %v3039_v7, %v1206_v22 }
 0x2a4   :  { %v1218_v26 = vadd.f32 %v2438_v24, %v3039_v7  ;;  %v1209_v27 = vpop.f32.mrb[39].mxu0 }
 0x2a5   :  { %v1210_v29 = vadd.f32 %v3039_v7, %v1209_v27 }
 0x2a6   :  { %v1980_v30 = vpack.c.bf16 %v1218_v26, %v1215_v25 }
 0x2a7   :  { %v1975_v31 = vpack.c.bf16 %v1210_v29, %v1207_v28 }
 0x2a8   :  { %2124 = vst [vmem:[#allocation2 + $0x18] sm:$0xff] %v1980_v30  }
 0x2a9   :  { %2123 = vst [vmem:[#allocation2 + $0x10] sm:$0xff] %v1975_v31   ;;  %v2441_v32 = vpop.f32.mrb[40].mxu0 }
 0x2aa   :  { %v1222_v33 = vpop.f32.mrb[41].mxu0  ;;  %v1231_v35 = vadd.f32 %v2441_v32, %v3039_v7 }
 0x2ab   :  { %v2442_v34 = vpop.f32.mrb[42].mxu0  ;;  %v1223_v38 = vadd.f32 %v3039_v7, %v1222_v33 }
 0x2ac   :  { %v1234_v36 = vadd.f32 %v2442_v34, %v3039_v7  ;;  %v1225_v37 = vpop.f32.mrb[43].mxu0 }
 0x2ad   :  { %v1226_v42 = vadd.f32 %v3039_v7, %v1225_v37 }
 0x2ae   :  { %v1990_v23 = vpack.c.bf16 %v1234_v36, %v1231_v35 }
 0x2af   :  { %v1985_v52 = vpack.c.bf16 %v1226_v42, %v1223_v38 }
 0x2b0   :  { %2126 = vst [vmem:[#allocation2 + $0x28] sm:$0xff] %v1990_v23  }
 0x2b1   :  { %2125 = vst [vmem:[#allocation2 + $0x20] sm:$0xff] %v1985_v52   ;;  %v2445_v54 = vpop.f32.mrb[44].mxu0 }
 0x2b2   :  { %v1238_v17 = vpop.f32.mrb[45].mxu0  ;;  %v1247_v48 = vadd.f32 %v2445_v54, %v3039_v7 }
 0x2b3   :  { %v2446_v19 = vpop.f32.mrb[46].mxu0  ;;  %v1239_v16 = vadd.f32 %v3039_v7, %v1238_v17 }
 0x2b4   :  { %v1250_v50 = vadd.f32 %v2446_v19, %v3039_v7  ;;  %v1241_v14 = vpop.f32.mrb[47].mxu0 }
 0x2b5   :  { %v1242_v39 = vadd.f32 %v3039_v7, %v1241_v14 }
 0x2b6   :  { %v2000_v40 = vpack.c.bf16 %v1250_v50, %v1247_v48 }
 0x2b7   :  { %v1995_v41 = vpack.c.bf16 %v1242_v39, %v1239_v16 }
 0x2b8   :  { %2128 = vst [vmem:[#allocation2 + $0x38] sm:$0xff] %v2000_v40  }
 0x2b9   :  { %2127 = vst [vmem:[#allocation2 + $0x30] sm:$0xff] %v1995_v41   ;;  %v2449_v43 = vpop.f32.mrb[48].mxu0 }
 0x2ba   :  { %v1254_v44 = vpop.f32.mrb[49].mxu0  ;;  %v1263_v46 = vadd.f32 %v2449_v43, %v3039_v7 }
 0x2bb   :  { %v2450_v45 = vpop.f32.mrb[50].mxu0  ;;  %v1255_v51 = vadd.f32 %v3039_v7, %v1254_v44 }
 0x2bc   :  { %v1266_v47 = vadd.f32 %v2450_v45, %v3039_v7  ;;  %v1257_v49 = vpop.f32.mrb[51].mxu0 }
 0x2bd   :  { %v1258_v53 = vadd.f32 %v3039_v7, %v1257_v49 }
 0x2be   :  { %v2010_v55 = vpack.c.bf16 %v1266_v47, %v1263_v46 }
 0x2bf   :  { %v2005_v56 = vpack.c.bf16 %v1258_v53, %v1255_v51 }
 0x2c0   :  { %2130 = vst [vmem:[#allocation2 + $0x48] sm:$0xff] %v2010_v55  }
 0x2c1   :  { %2129 = vst [vmem:[#allocation2 + $0x40] sm:$0xff] %v2005_v56   ;;  %v2453_v57 = vpop.f32.mrb[52].mxu0 }
 0x2c2   :  { %v1270_v58 = vpop.f32.mrb[53].mxu0  ;;  %v1279_v60 = vadd.f32 %v2453_v57, %v3039_v7 }
 0x2c3   :  { %v2454_v59 = vpop.f32.mrb[54].mxu0  ;;  %v1271_v63 = vadd.f32 %v3039_v7, %v1270_v58 }
 0x2c4   :  { %v1282_v61 = vadd.f32 %v2454_v59, %v3039_v7  ;;  %v1273_v62 = vpop.f32.mrb[55].mxu0 }
 0x2c5   :  { %v1274_v0 = vadd.f32 %v3039_v7, %v1273_v62 }
 0x2c6   :  { %v2020_v1 = vpack.c.bf16 %v1282_v61, %v1279_v60 }
 0x2c7   :  { %v2015_v2 = vpack.c.bf16 %v1274_v0, %v1271_v63 }
 0x2c8   :  { %2132 = vst [vmem:[#allocation2 + $0x58] sm:$0xff] %v2020_v1  }
 0x2c9   :  { %2131 = vst [vmem:[#allocation2 + $0x50] sm:$0xff] %v2015_v2   ;;  %v2457_v3 = vpop.f32.mrb[56].mxu0 }
 0x2ca   :  { %v1286_v4 = vpop.f32.mrb[57].mxu0  ;;  %v1295_v6 = vadd.f32 %v2457_v3, %v3039_v7 }
 0x2cb   :  { %v2458_v5 = vpop.f32.mrb[58].mxu0  ;;  %v1287_v10 = vadd.f32 %v3039_v7, %v1286_v4 }
 0x2cc   :  { %v1298_v8 = vadd.f32 %v2458_v5, %v3039_v7  ;;  %v1289_v9 = vpop.f32.mrb[59].mxu0 }
 0x2cd   :  { %v1290_v21 = vadd.f32 %v3039_v7, %v1289_v9 }
 0x2ce   :  { %v2030_v11 = vpack.c.bf16 %v1298_v8, %v1295_v6 }
 0x2cf   :  { %v2025_v12 = vpack.c.bf16 %v1290_v21, %v1287_v10 }
 0x2d0   :  { %2134 = vst [vmem:[#allocation2 + $0x68] sm:$0xff] %v2030_v11  }
 0x2d1   :  { %2133 = vst [vmem:[#allocation2 + $0x60] sm:$0xff] %v2025_v12   ;;  %v2461_v13 = vpop.f32.mrb[60].mxu0 }
 0x2d2   :  { %v1302_v15 = vpop.f32.mrb[61].mxu0  ;;  %v1311_v20 = vadd.f32 %v2461_v13, %v3039_v7 }
 0x2d3   :  { %v2462_v18 = vpop.f32.mrb[62].mxu0  ;;  %v1303_v25 = vadd.f32 %v3039_v7, %v1302_v15 }
 0x2d4   :  { %v1314_v22 = vadd.f32 %v2462_v18, %v3039_v7  ;;  %v1305_v24 = vpop.f32.mrb[63].mxu0 }
 0x2d5   :  { %v1306_v26 = vadd.f32 %v3039_v7, %v1305_v24 }
 0x2d6   :  { %v2040_v27 = vpack.c.bf16 %v1314_v22, %v1311_v20 }
 0x2d7   :  { %v2035_v28 = vpack.c.bf16 %v1306_v26, %v1303_v25 }
 0x2d8   :  { %2136 = vst [vmem:[#allocation2 + $0x78] sm:$0xff] %v2040_v27  }
 0x2d9   :  { %2135 = vst [vmem:[#allocation2 + $0x70] sm:$0xff] %v2035_v28   ;;  %v2465_v29 = vpop.f32.mrb[64].mxu0 }
 0x2da   :  { %v1318_v30 = vpop.f32.mrb[65].mxu0  ;;  %v1327_v32 = vadd.f32 %v2465_v29, %v3039_v7 }
 0x2db   :  { %v2466_v31 = vpop.f32.mrb[66].mxu0  ;;  %v1319_v35 = vadd.f32 %v3039_v7, %v1318_v30 }
 0x2dc   :  { %v1330_v33 = vadd.f32 %v2466_v31, %v3039_v7  ;;  %v1321_v34 = vpop.f32.mrb[67].mxu0 }
 0x2dd   :  { %v1322_v36 = vadd.f32 %v3039_v7, %v1321_v34 }
 0x2de   :  { %v2050_v37 = vpack.c.bf16 %v1330_v33, %v1327_v32 }
 0x2df   :  { %v2045_v38 = vpack.c.bf16 %v1322_v36, %v1319_v35 }
 0x2e0   :  { %2138 = vst [vmem:[#allocation2 + $0x88] sm:$0xff] %v2050_v37  }
 0x2e1   :  { %2137 = vst [vmem:[#allocation2 + $0x80] sm:$0xff] %v2045_v38   ;;  %v2469_v42 = vpop.f32.mrb[68].mxu0 }
 0x2e2   :  { %v1334_v23 = vpop.f32.mrb[69].mxu0  ;;  %v1343_v54 = vadd.f32 %v2469_v42, %v3039_v7 }
 0x2e3   :  { %v2470_v52 = vpop.f32.mrb[70].mxu0  ;;  %v1335_v48 = vadd.f32 %v3039_v7, %v1334_v23 }
 0x2e4   :  { %v1346_v17 = vadd.f32 %v2470_v52, %v3039_v7  ;;  %v1337_v19 = vpop.f32.mrb[71].mxu0 }
 0x2e5   :  { %v1338_v50 = vadd.f32 %v3039_v7, %v1337_v19 }
 0x2e6   :  { %v2060_v14 = vpack.c.bf16 %v1346_v17, %v1343_v54 }
 0x2e7   :  { %v2055_v16 = vpack.c.bf16 %v1338_v50, %v1335_v48 }
 0x2e8   :  { %2140 = vst [vmem:[#allocation2 + $0x98] sm:$0xff] %v2060_v14  }
 0x2e9   :  { %2139 = vst [vmem:[#allocation2 + $0x90] sm:$0xff] %v2055_v16   ;;  %v2473_v39 = vpop.f32.mrb[72].mxu0 }
 0x2ea   :  { %v1350_v40 = vpop.f32.mrb[73].mxu0  ;;  %v1359_v43 = vadd.f32 %v2473_v39, %v3039_v7 }
 0x2eb   :  { %v2474_v41 = vpop.f32.mrb[74].mxu0  ;;  %v1351_v46 = vadd.f32 %v3039_v7, %v1350_v40 }
 0x2ec   :  { %v1362_v44 = vadd.f32 %v2474_v41, %v3039_v7  ;;  %v1353_v45 = vpop.f32.mrb[75].mxu0 }
 0x2ed   :  { %v1354_v47 = vadd.f32 %v3039_v7, %v1353_v45 }
 0x2ee   :  { %v2070_v49 = vpack.c.bf16 %v1362_v44, %v1359_v43 }
 0x2ef   :  { %v2065_v51 = vpack.c.bf16 %v1354_v47, %v1351_v46 }
 0x2f0   :  { %2142 = vst [vmem:[#allocation2 + $0xa8] sm:$0xff] %v2070_v49  }
 0x2f1   :  { %2141 = vst [vmem:[#allocation2 + $0xa0] sm:$0xff] %v2065_v51   ;;  %v2477_v53 = vpop.f32.mrb[76].mxu0 }
 0x2f2   :  { %v1366_v55 = vpop.f32.mrb[77].mxu0  ;;  %v1375_v57 = vadd.f32 %v2477_v53, %v3039_v7 }
 0x2f3   :  { %v2478_v56 = vpop.f32.mrb[78].mxu0  ;;  %v1367_v60 = vadd.f32 %v3039_v7, %v1366_v55 }
 0x2f4   :  { %v1378_v58 = vadd.f32 %v2478_v56, %v3039_v7  ;;  %v1369_v59 = vpop.f32.mrb[79].mxu0 }
 0x2f5   :  { %v1370_v61 = vadd.f32 %v3039_v7, %v1369_v59 }
 0x2f6   :  { %v2080_v62 = vpack.c.bf16 %v1378_v58, %v1375_v57 }
 0x2f7   :  { %v2075_v63 = vpack.c.bf16 %v1370_v61, %v1367_v60 }
 0x2f8   :  { %2144 = vst [vmem:[#allocation2 + $0xb8] sm:$0xff] %v2080_v62  }
 0x2f9   :  { %2143 = vst [vmem:[#allocation2 + $0xb0] sm:$0xff] %v2075_v63   ;;  %v2481_v0 = vpop.f32.mrb[80].mxu0 }
 0x2fa   :  { %v1382_v1 = vpop.f32.mrb[81].mxu0  ;;  %v1391_v3 = vadd.f32 %v2481_v0, %v3039_v7 }
 0x2fb   :  { %v2482_v2 = vpop.f32.mrb[82].mxu0  ;;  %v1383_v6 = vadd.f32 %v3039_v7, %v1382_v1 }
 0x2fc   :  { %v1394_v4 = vadd.f32 %v2482_v2, %v3039_v7  ;;  %v1385_v5 = vpop.f32.mrb[83].mxu0 }
 0x2fd   :  { %v1386_v8 = vadd.f32 %v3039_v7, %v1385_v5 }
 0x2fe   :  { %v2090_v9 = vpack.c.bf16 %v1394_v4, %v1391_v3 }
 0x2ff   :  { %v2085_v10 = vpack.c.bf16 %v1386_v8, %v1383_v6 }
 0x300   :  { %2146 = vst [vmem:[#allocation2 + $0xc8] sm:$0xff] %v2090_v9  }
 0x301   :  { %2145 = vst [vmem:[#allocation2 + $0xc0] sm:$0xff] %v2085_v10   ;;  %v2485_v21 = vpop.f32.mrb[84].mxu0 }
 0x302   :  { %v1398_v11 = vpop.f32.mrb[85].mxu0  ;;  %v1407_v13 = vadd.f32 %v2485_v21, %v3039_v7 }
 0x303   :  { %v2486_v12 = vpop.f32.mrb[86].mxu0  ;;  %v1399_v20 = vadd.f32 %v3039_v7, %v1398_v11 }
 0x304   :  { %v1410_v15 = vadd.f32 %v2486_v12, %v3039_v7  ;;  %v1401_v18 = vpop.f32.mrb[87].mxu0 }
 0x305   :  { %v1402_v22 = vadd.f32 %v3039_v7, %v1401_v18 }
 0x306   :  { %v2100_v24 = vpack.c.bf16 %v1410_v15, %v1407_v13 }
 0x307   :  { %v2095_v25 = vpack.c.bf16 %v1402_v22, %v1399_v20 }
 0x308   :  { %2148 = vst [vmem:[#allocation2 + $0xd8] sm:$0xff] %v2100_v24  }
 0x309   :  { %2147 = vst [vmem:[#allocation2 + $0xd0] sm:$0xff] %v2095_v25   ;;  %v2489_v26 = vpop.f32.mrb[88].mxu0 }
 0x30a   :  { %v1414_v27 = vpop.f32.mrb[89].mxu0  ;;  %v1423_v29 = vadd.f32 %v2489_v26, %v3039_v7 }
 0x30b   :  { %v2490_v28 = vpop.f32.mrb[90].mxu0  ;;  %v1415_v32 = vadd.f32 %v3039_v7, %v1414_v27 }
 0x30c   :  { %v1426_v30 = vadd.f32 %v2490_v28, %v3039_v7  ;;  %v1417_v31 = vpop.f32.mrb[91].mxu0 }
 0x30d   :  { %v1418_v33 = vadd.f32 %v3039_v7, %v1417_v31 }
 0x30e   :  { %v2110_v34 = vpack.c.bf16 %v1426_v30, %v1423_v29 }
 0x30f   :  { %v2105_v35 = vpack.c.bf16 %v1418_v33, %v1415_v32 }
 0x310   :  { %2150 = vst [vmem:[#allocation2 + $0xe8] sm:$0xff] %v2110_v34  }
 0x311   :  { %2149 = vst [vmem:[#allocation2 + $0xe0] sm:$0xff] %v2105_v35   ;;  %v2493_v36 = vpop.f32.mrb[92].mxu0 }
 0x312   :  { %v1430_v37 = vpop.f32.mrb[93].mxu0  ;;  %v1439_v42 = vadd.f32 %v2493_v36, %v3039_v7 }
 0x313   :  { %v2494_v38 = vpop.f32.mrb[94].mxu0  ;;  %v1431_v54 = vadd.f32 %v3039_v7, %v1430_v37 }
 0x314   :  { %v1442_v23 = vadd.f32 %v2494_v38, %v3039_v7  ;;  %v1433_v52 = vpop.f32.mrb[95].mxu0 }
 0x315   :  { %v1434_v17 = vadd.f32 %v3039_v7, %v1433_v52 }
 0x316   :  { %v2120_v19 = vpack.c.bf16 %v1442_v23, %v1439_v42 }
 0x317   :  { %v2115_v48 = vpack.c.bf16 %v1434_v17, %v1431_v54 }
 0x318   :  { %2152 = vst [vmem:[#allocation2 + $0xf8] sm:$0xff] %v2120_v19  }
 0x319   :  { %2151 = vst [vmem:[#allocation2 + $0xf0] sm:$0xff] %v2115_v48  }
 0x31a   :  { %2531 = shalt.err (!%p2528_p4)
}
 0x31b   :  { %s2532_s25 = scalar_lea.hbm %s3124_s7, 4096 }
 0x31c   :  { %p2533_p5 = scmp.ne.s32.totalorder %s3124_s7, %s2532_s25  ;;  %p2536_p6 = scmp.lt.u32.totalorder %s2532_s25, %s3124_s7 }
 0x31e   :  { %p2538_p7 = pnand %p2536_p6, %p2533_p5 }
 0x320   :  { %2541 = shalt.err (!%p2538_p7)
}
 0x321   :  { %s2545_s0 = smov 64   ;;  %s2546_s30 = smov 4  }
 0x322   :  { %1776 = dma.vmem_to_hbm [thread:$0]  %s1771_s21, 4096, %s3124_s7, [#allocation3], %s2545_s0, %s2545_s0, %s2546_s30  }
 0x323   :  { %2542 = dma.done.wait [#allocation3], 4096  }
 0x324   :  { %2543 = vsyncadd [#allocation3], 4294963200 }
 0x325   :  { %1780 = vsyncpa [#allocation3], 1 }

</bundles_post_ra>
